<compile_context>
chip_gen: v5e
topology: v5e:2x2
jax: 0.10.0
libtpu: 0.0.40
codegen_flags: <defaults>
</compile_context>

<pallas_src>
import jax
import jax.numpy as jnp
from jax.experimental import pallas as pl
from jax.experimental.pallas import tpu as pltpu


def _lstm_kernel(x_ref, wih_ref, whh_ref, b_ref, wl_ref, bl_ref,
                 h0_ref, c0_ref, out_ref, gx_scr, hs_scr):
    """Single-invocation LSTM + Linear.

    x_ref:  (B, T, I)   input (batch, time=num_predicate, feature=seq_length)
    wih:    (I, 4H)     W_ih^T, gate columns stacked PyTorch-style [i, f, g, o]
    whh:    (H, 4H)     W_hh^T
    b:      (1, 4H)     b_ih + b_hh
    wl:     (H, O)      W_linear^T
    bl:     (1, O)      b_linear
    h0,c0:  (B, H)
    out:    (B, T, O)
    gx_scr: (B, T, 4H)  VMEM scratch: precomputed input-projection gates
    hs_scr: (B, T, H)   VMEM scratch: per-timestep hidden states
    """
    B, T, I = x_ref.shape
    H = whh_ref.shape[0]
    O = out_ref.shape[2]

    # ---- Bulk input projection, hoisted out of the recurrence: ------------
    # one (B*T, I) @ (I, 4H) MXU matmul covers every timestep.
    x_flat = x_ref[...].reshape(B * T, I)
    gx = jnp.dot(x_flat, wih_ref[...],
                 preferred_element_type=jnp.float32) + b_ref[...]
    gx_scr[...] = gx.reshape(B, T, 4 * H)

    whh = whh_ref[...]
    wl = wl_ref[...]
    h = h0_ref[...]          # (B, H), lives in vregs across the whole loop
    c = c0_ref[...]          # (B, H)

    # ---- Recurrence: static (fully unrolled) time loop. Only the single ---
    # h @ W_hh matmul remains on the serial dependency chain per step.
    for t in range(T):
        gates = gx_scr[:, t, :] + jnp.dot(h, whh,
                                          preferred_element_type=jnp.float32)
        # Full-width transcendentals (EUP slot) over the (B, 4H) vreg, then
        # cheap static lane slices to pick the gates.
        sg = jax.nn.sigmoid(gates)
        tg = jnp.tanh(gates)
        i_g = sg[:, 0 * H:1 * H]
        f_g = sg[:, 1 * H:2 * H]
        g_g = tg[:, 2 * H:3 * H]
        o_g = sg[:, 3 * H:4 * H]
        c = f_g * c + i_g * g_g
        h = o_g * jnp.tanh(c)
        hs_scr[:, t, :] = h          # static index -> plain sublane store

    # ---- Bulk output projection (nn.Linear): one matmul + one store, ------
    # written directly in (B, T, O) so the wrapper needs no transpose.
    hs = hs_scr[...].reshape(B * T, H)
    y = jnp.dot(hs, wl, preferred_element_type=jnp.float32) + bl_ref[...]
    out_ref[...] = y.reshape(B, T, O).astype(out_ref.dtype)


def lstm_encoding_action(x, wih, whh, b, wl, bl, h0, c0):
    """x: (batch, num_predicate, seq_length) -> (batch, num_predicate, output_size)."""
    B, T, I = x.shape
    H = whh.shape[0]
    O = wl.shape[1]

    vmem_specs = [pl.BlockSpec(memory_space=pltpu.MemorySpace.VMEM)
                  for _ in range(8)]

    return pl.pallas_call(
        _lstm_kernel,
        out_shape=jax.ShapeDtypeStruct((B, T, O), jnp.float32),
        in_specs=vmem_specs,
        out_specs=pl.BlockSpec(memory_space=pltpu.MemorySpace.VMEM),
        scratch_shapes=[
            pltpu.VMEM((B, T, 4 * H), jnp.float32),   # hoisted input-projection gates
            pltpu.VMEM((B, T, H), jnp.float32),       # staged hidden states
        ],
    )(x, wih, whh, b, wl, bl, h0, c0)


def lstm_encoding_action_ref(x, wih, whh, b, wl, bl, h0, c0):
    """Pure-JAX reference matching PyTorch nn.LSTM(batch_first) + nn.Linear."""
    H = whh.shape[0]

    def step(carry, xt):
        h, c = carry
        gates = xt @ wih + h @ whh + b
        i = jax.nn.sigmoid(gates[:, 0 * H:1 * H])
        f = jax.nn.sigmoid(gates[:, 1 * H:2 * H])
        g = jnp.tanh(gates[:, 2 * H:3 * H])
        o = jax.nn.sigmoid(gates[:, 3 * H:4 * H])
        c = f * c + i * g
        h = o * jnp.tanh(c)
        return (h, c), h

    with jax.default_matmul_precision("float32"):
        (_, _), hs = jax.lax.scan(step, (h0, c0), jnp.transpose(x, (1, 0, 2)))
        y = hs @ wl + bl                               # (T, B, O)
    return jnp.transpose(y, (1, 0, 2))                 # (B, T, O)


if __name__ == "__main__":
    # Shapes consistent with the module's forward:
    #   x: [batch_size, num_predicate, seq_length]
    #   LSTM time axis == num_predicate, input_size == seq_length
    batch_size = 2
    num_predicate = 8      # LSTM sequence length
    seq_length = 16        # LSTM input_size
    hidden_size = 32
    output_size = 16

    key = jax.random.PRNGKey(0)
    kx, kwih, kwhh, kbih, kbhh, kwl, kbl, kh0, kc0 = jax.random.split(key, 9)

    # PyTorch-style uniform(-1/sqrt(H), 1/sqrt(H)) parameter init.
    bound = 1.0 / jnp.sqrt(jnp.float32(hidden_size))
    wih = jax.random.uniform(kwih, (seq_length, 4 * hidden_size), jnp.float32, -bound, bound)
    whh = jax.random.uniform(kwhh, (hidden_size, 4 * hidden_size), jnp.float32, -bound, bound)
    b_ih = jax.random.uniform(kbih, (4 * hidden_size,), jnp.float32, -bound, bound)
    b_hh = jax.random.uniform(kbhh, (4 * hidden_size,), jnp.float32, -bound, bound)
    b = (b_ih + b_hh).reshape(1, 4 * hidden_size)

    lin_bound = 1.0 / jnp.sqrt(jnp.float32(hidden_size))
    wl = jax.random.uniform(kwl, (hidden_size, output_size), jnp.float32, -lin_bound, lin_bound)
    bl = jax.random.uniform(kbl, (1, output_size), jnp.float32, -lin_bound, lin_bound)

    # The PyTorch forward draws h_0 / c_0 from torch.randn each call; here they
    # are deterministic explicit inputs so kernel and reference can be compared.
    h0 = jax.random.normal(kh0, (batch_size, hidden_size), jnp.float32)
    c0 = jax.random.normal(kc0, (batch_size, hidden_size), jnp.float32)

    x = jax.random.normal(kx, (batch_size, num_predicate, seq_length), jnp.float32)

    out = jax.block_until_ready(
        lstm_encoding_action(x, wih, whh, b, wl, bl, h0, c0))
    ref = jax.block_until_ready(
        lstm_encoding_action_ref(x, wih, whh, b, wl, bl, h0, c0))

    assert out.shape == (batch_size, num_predicate, output_size), out.shape
    assert jnp.allclose(out, ref, atol=1e-5, rtol=1e-5), (
        float(jnp.max(jnp.abs(out - ref))))

    print("KERNEL_OK")
</pallas_src>

<mosaic_0001>
module attributes {stable_mosaic.version = 11 : i64} {
  func.func @_lstm_kernel(%arg0: memref<2x8x16xf32, #tpu.memory_space<vmem>>, %arg1: memref<16x128xf32, #tpu.memory_space<vmem>>, %arg2: memref<32x128xf32, #tpu.memory_space<vmem>>, %arg3: memref<1x128xf32, #tpu.memory_space<vmem>>, %arg4: memref<32x16xf32, #tpu.memory_space<vmem>>, %arg5: memref<1x16xf32, #tpu.memory_space<vmem>>, %arg6: memref<2x32xf32, #tpu.memory_space<vmem>>, %arg7: memref<2x32xf32, #tpu.memory_space<vmem>>, %arg8: memref<2x8x16xf32, #tpu.memory_space<vmem>>, %arg9: memref<2x8x128xf32, #tpu.memory_space<vmem>>, %arg10: memref<2x8x32xf32, #tpu.memory_space<vmem>>) attributes {dimension_semantics = [], scalar_prefetch = 0 : i64, scratch_operands = 2 : i64, tpu.core_type = #tpu.core_type<tc>} {
    %c0 = arith.constant 0 : index
    %c0_0 = arith.constant 0 : index
    %c0_1 = arith.constant 0 : index
    %0 = vector.load %arg0[%c0, %c0_0, %c0_1] : memref<2x8x16xf32, #tpu.memory_space<vmem>>, vector<2x8x16xf32>
    %1 = vector.shape_cast %0 : vector<2x8x16xf32> to vector<16x16xf32>
    %c0_2 = arith.constant 0 : index
    %c0_3 = arith.constant 0 : index
    %2 = vector.load %arg1[%c0_2, %c0_3] : memref<16x128xf32, #tpu.memory_space<vmem>>, vector<16x128xf32>
    %cst = arith.constant dense<0.000000e+00> : vector<16x128xf32>
    %3 = tpu.matmul %1, %2, %cst {dimension_numbers = #tpu.dot_dimension_numbers<[1], [0], [0], [1], [0, 0, 1, 1], [], []>} : vector<16x16xf32>, vector<16x128xf32>, vector<16x128xf32> -> vector<16x128xf32>
    %c0_4 = arith.constant 0 : index
    %c0_5 = arith.constant 0 : index
    %4 = vector.load %arg3[%c0_4, %c0_5] : memref<1x128xf32, #tpu.memory_space<vmem>>, vector<1x128xf32>
    %5 = vector.broadcast %4 : vector<1x128xf32> to vector<16x128xf32>
    %6 = arith.addf %3, %5 : vector<16x128xf32>
    %7 = vector.shape_cast %6 : vector<16x128xf32> to vector<2x8x128xf32>
    %c0_6 = arith.constant 0 : index
    %c0_7 = arith.constant 0 : index
    %c0_8 = arith.constant 0 : index
    %8 = vector.load %arg9[%c0_6, %c0_7, %c0_8] : memref<2x8x128xf32, #tpu.memory_space<vmem>>, vector<2x8x128xf32>
    tpu.vector_store %arg9[%c0_6, %c0_7, %c0_8], %7 {strides = array<i32>} : memref<2x8x128xf32, #tpu.memory_space<vmem>>, vector<2x8x128xf32>,
    %c0_9 = arith.constant 0 : index
    %c0_10 = arith.constant 0 : index
    %9 = vector.load %arg2[%c0_9, %c0_10] : memref<32x128xf32, #tpu.memory_space<vmem>>, vector<32x128xf32>
    %c0_11 = arith.constant 0 : index
    %c0_12 = arith.constant 0 : index
    %10 = vector.load %arg4[%c0_11, %c0_12] : memref<32x16xf32, #tpu.memory_space<vmem>>, vector<32x16xf32>
    %c0_13 = arith.constant 0 : index
    %c0_14 = arith.constant 0 : index
    %11 = vector.load %arg6[%c0_13, %c0_14] : memref<2x32xf32, #tpu.memory_space<vmem>>, vector<2x32xf32>
    %c0_15 = arith.constant 0 : index
    %c0_16 = arith.constant 0 : index
    %12 = vector.load %arg7[%c0_15, %c0_16] : memref<2x32xf32, #tpu.memory_space<vmem>>, vector<2x32xf32>
    %c0_17 = arith.constant 0 : index
    %c0_18 = arith.constant 0 : index
    %c0_19 = arith.constant 0 : index
    %13 = vector.load %arg9[%c0_17, %c0_18, %c0_19] : memref<2x8x128xf32, #tpu.memory_space<vmem>>, vector<2x1x128xf32>
    %14 = vector.shape_cast %13 : vector<2x1x128xf32> to vector<2x128xf32>
    %cst_20 = arith.constant dense<0.000000e+00> : vector<2x128xf32>
    %15 = tpu.matmul %11, %9, %cst_20 {dimension_numbers = #tpu.dot_dimension_numbers<[1], [0], [0], [1], [0, 0, 1, 1], [], []>} : vector<2x32xf32>, vector<32x128xf32>, vector<2x128xf32> -> vector<2x128xf32>
    %16 = arith.addf %14, %15 : vector<2x128xf32>
    %17 = arith.negf %16 : vector<2x128xf32>
    %18 = math.exp %17 : vector<2x128xf32>
    %cst_21 = arith.constant 1.000000e+00 : f32
    %19 = vector.broadcast %cst_21 : f32 to vector<2x128xf32>
    %20 = arith.addf %19, %18 : vector<2x128xf32>
    %21 = arith.divf %19, %20 : vector<2x128xf32>
    %22 = math.tanh %16 : vector<2x128xf32>
    %23 = vector.extract_strided_slice %21 {offsets = [0, 0], sizes = [2, 32], strides = [1, 1]} : vector<2x128xf32> to vector<2x32xf32>
    %24 = vector.extract_strided_slice %21 {offsets = [0, 32], sizes = [2, 32], strides = [1, 1]} : vector<2x128xf32> to vector<2x32xf32>
    %25 = vector.extract_strided_slice %22 {offsets = [0, 64], sizes = [2, 32], strides = [1, 1]} : vector<2x128xf32> to vector<2x32xf32>
    %26 = vector.extract_strided_slice %21 {offsets = [0, 96], sizes = [2, 32], strides = [1, 1]} : vector<2x128xf32> to vector<2x32xf32>
    %27 = arith.mulf %24, %12 : vector<2x32xf32>
    %28 = arith.mulf %23, %25 : vector<2x32xf32>
    %29 = arith.addf %27, %28 : vector<2x32xf32>
    %30 = math.tanh %29 : vector<2x32xf32>
    %31 = arith.mulf %26, %30 : vector<2x32xf32>
    %c0_22 = arith.constant 0 : index
    %c0_23 = arith.constant 0 : index
    %c0_24 = arith.constant 0 : index
    %32 = vector.load %arg10[%c0_22, %c0_23, %c0_24] : memref<2x8x32xf32, #tpu.memory_space<vmem>>, vector<2x1x32xf32>
    %33 = vector.shape_cast %32 : vector<2x1x32xf32> to vector<2x32xf32>
    %34 = vector.shape_cast %31 : vector<2x32xf32> to vector<2x1x32xf32>
    tpu.vector_store %arg10[%c0_22, %c0_23, %c0_24], %34 {strides = array<i32>} : memref<2x8x32xf32, #tpu.memory_space<vmem>>, vector<2x1x32xf32>,
    %c0_25 = arith.constant 0 : index
    %c1 = arith.constant 1 : index
    %c0_26 = arith.constant 0 : index
    %35 = vector.load %arg9[%c0_25, %c1, %c0_26] : memref<2x8x128xf32, #tpu.memory_space<vmem>>, vector<2x1x128xf32>
    %36 = vector.shape_cast %35 : vector<2x1x128xf32> to vector<2x128xf32>
    %cst_27 = arith.constant dense<0.000000e+00> : vector<2x128xf32>
    %37 = tpu.matmul %31, %9, %cst_27 {dimension_numbers = #tpu.dot_dimension_numbers<[1], [0], [0], [1], [0, 0, 1, 1], [], []>} : vector<2x32xf32>, vector<32x128xf32>, vector<2x128xf32> -> vector<2x128xf32>
    %38 = arith.addf %36, %37 : vector<2x128xf32>
    %39 = arith.negf %38 : vector<2x128xf32>
    %40 = math.exp %39 : vector<2x128xf32>
    %cst_28 = arith.constant 1.000000e+00 : f32
    %41 = vector.broadcast %cst_28 : f32 to vector<2x128xf32>
    %42 = arith.addf %41, %40 : vector<2x128xf32>
    %43 = arith.divf %41, %42 : vector<2x128xf32>
    %44 = math.tanh %38 : vector<2x128xf32>
    %45 = vector.extract_strided_slice %43 {offsets = [0, 0], sizes = [2, 32], strides = [1, 1]} : vector<2x128xf32> to vector<2x32xf32>
    %46 = vector.extract_strided_slice %43 {offsets = [0, 32], sizes = [2, 32], strides = [1, 1]} : vector<2x128xf32> to vector<2x32xf32>
    %47 = vector.extract_strided_slice %44 {offsets = [0, 64], sizes = [2, 32], strides = [1, 1]} : vector<2x128xf32> to vector<2x32xf32>
    %48 = vector.extract_strided_slice %43 {offsets = [0, 96], sizes = [2, 32], strides = [1, 1]} : vector<2x128xf32> to vector<2x32xf32>
    %49 = arith.mulf %46, %29 : vector<2x32xf32>
    %50 = arith.mulf %45, %47 : vector<2x32xf32>
    %51 = arith.addf %49, %50 : vector<2x32xf32>
    %52 = math.tanh %51 : vector<2x32xf32>
    %53 = arith.mulf %48, %52 : vector<2x32xf32>
    %c0_29 = arith.constant 0 : index
    %c1_30 = arith.constant 1 : index
    %c0_31 = arith.constant 0 : index
    %54 = vector.load %arg10[%c0_29, %c1_30, %c0_31] : memref<2x8x32xf32, #tpu.memory_space<vmem>>, vector<2x1x32xf32>
    %55 = vector.shape_cast %54 : vector<2x1x32xf32> to vector<2x32xf32>
    %56 = vector.shape_cast %53 : vector<2x32xf32> to vector<2x1x32xf32>
    tpu.vector_store %arg10[%c0_29, %c1_30, %c0_31], %56 {strides = array<i32>} : memref<2x8x32xf32, #tpu.memory_space<vmem>>, vector<2x1x32xf32>,
    %c0_32 = arith.constant 0 : index
    %c2 = arith.constant 2 : index
    %c0_33 = arith.constant 0 : index
    %57 = vector.load %arg9[%c0_32, %c2, %c0_33] : memref<2x8x128xf32, #tpu.memory_space<vmem>>, vector<2x1x128xf32>
    %58 = vector.shape_cast %57 : vector<2x1x128xf32> to vector<2x128xf32>
    %cst_34 = arith.constant dense<0.000000e+00> : vector<2x128xf32>
    %59 = tpu.matmul %53, %9, %cst_34 {dimension_numbers = #tpu.dot_dimension_numbers<[1], [0], [0], [1], [0, 0, 1, 1], [], []>} : vector<2x32xf32>, vector<32x128xf32>, vector<2x128xf32> -> vector<2x128xf32>
    %60 = arith.addf %58, %59 : vector<2x128xf32>
    %61 = arith.negf %60 : vector<2x128xf32>
    %62 = math.exp %61 : vector<2x128xf32>
    %cst_35 = arith.constant 1.000000e+00 : f32
    %63 = vector.broadcast %cst_35 : f32 to vector<2x128xf32>
    %64 = arith.addf %63, %62 : vector<2x128xf32>
    %65 = arith.divf %63, %64 : vector<2x128xf32>
    %66 = math.tanh %60 : vector<2x128xf32>
    %67 = vector.extract_strided_slice %65 {offsets = [0, 0], sizes = [2, 32], strides = [1, 1]} : vector<2x128xf32> to vector<2x32xf32>
    %68 = vector.extract_strided_slice %65 {offsets = [0, 32], sizes = [2, 32], strides = [1, 1]} : vector<2x128xf32> to vector<2x32xf32>
    %69 = vector.extract_strided_slice %66 {offsets = [0, 64], sizes = [2, 32], strides = [1, 1]} : vector<2x128xf32> to vector<2x32xf32>
    %70 = vector.extract_strided_slice %65 {offsets = [0, 96], sizes = [2, 32], strides = [1, 1]} : vector<2x128xf32> to vector<2x32xf32>
    %71 = arith.mulf %68, %51 : vector<2x32xf32>
    %72 = arith.mulf %67, %69 : vector<2x32xf32>
    %73 = arith.addf %71, %72 : vector<2x32xf32>
    %74 = math.tanh %73 : vector<2x32xf32>
    %75 = arith.mulf %70, %74 : vector<2x32xf32>
    %c0_36 = arith.constant 0 : index
    %c2_37 = arith.constant 2 : index
    %c0_38 = arith.constant 0 : index
    %76 = vector.load %arg10[%c0_36, %c2_37, %c0_38] : memref<2x8x32xf32, #tpu.memory_space<vmem>>, vector<2x1x32xf32>
    %77 = vector.shape_cast %76 : vector<2x1x32xf32> to vector<2x32xf32>
    %78 = vector.shape_cast %75 : vector<2x32xf32> to vector<2x1x32xf32>
    tpu.vector_store %arg10[%c0_36, %c2_37, %c0_38], %78 {strides = array<i32>} : memref<2x8x32xf32, #tpu.memory_space<vmem>>, vector<2x1x32xf32>,
    %c0_39 = arith.constant 0 : index
    %c3 = arith.constant 3 : index
    %c0_40 = arith.constant 0 : index
    %79 = vector.load %arg9[%c0_39, %c3, %c0_40] : memref<2x8x128xf32, #tpu.memory_space<vmem>>, vector<2x1x128xf32>
    %80 = vector.shape_cast %79 : vector<2x1x128xf32> to vector<2x128xf32>
    %cst_41 = arith.constant dense<0.000000e+00> : vector<2x128xf32>
    %81 = tpu.matmul %75, %9, %cst_41 {dimension_numbers = #tpu.dot_dimension_numbers<[1], [0], [0], [1], [0, 0, 1, 1], [], []>} : vector<2x32xf32>, vector<32x128xf32>, vector<2x128xf32> -> vector<2x128xf32>
    %82 = arith.addf %80, %81 : vector<2x128xf32>
    %83 = arith.negf %82 : vector<2x128xf32>
    %84 = math.exp %83 : vector<2x128xf32>
    %cst_42 = arith.constant 1.000000e+00 : f32
    %85 = vector.broadcast %cst_42 : f32 to vector<2x128xf32>
    %86 = arith.addf %85, %84 : vector<2x128xf32>
    %87 = arith.divf %85, %86 : vector<2x128xf32>
    %88 = math.tanh %82 : vector<2x128xf32>
    %89 = vector.extract_strided_slice %87 {offsets = [0, 0], sizes = [2, 32], strides = [1, 1]} : vector<2x128xf32> to vector<2x32xf32>
    %90 = vector.extract_strided_slice %87 {offsets = [0, 32], sizes = [2, 32], strides = [1, 1]} : vector<2x128xf32> to vector<2x32xf32>
    %91 = vector.extract_strided_slice %88 {offsets = [0, 64], sizes = [2, 32], strides = [1, 1]} : vector<2x128xf32> to vector<2x32xf32>
    %92 = vector.extract_strided_slice %87 {offsets = [0, 96], sizes = [2, 32], strides = [1, 1]} : vector<2x128xf32> to vector<2x32xf32>
    %93 = arith.mulf %90, %73 : vector<2x32xf32>
    %94 = arith.mulf %89, %91 : vector<2x32xf32>
    %95 = arith.addf %93, %94 : vector<2x32xf32>
    %96 = math.tanh %95 : vector<2x32xf32>
    %97 = arith.mulf %92, %96 : vector<2x32xf32>
    %c0_43 = arith.constant 0 : index
    %c3_44 = arith.constant 3 : index
    %c0_45 = arith.constant 0 : index
    %98 = vector.load %arg10[%c0_43, %c3_44, %c0_45] : memref<2x8x32xf32, #tpu.memory_space<vmem>>, vector<2x1x32xf32>
    %99 = vector.shape_cast %98 : vector<2x1x32xf32> to vector<2x32xf32>
    %100 = vector.shape_cast %97 : vector<2x32xf32> to vector<2x1x32xf32>
    tpu.vector_store %arg10[%c0_43, %c3_44, %c0_45], %100 {strides = array<i32>} : memref<2x8x32xf32, #tpu.memory_space<vmem>>, vector<2x1x32xf32>,
    %c0_46 = arith.constant 0 : index
    %c4 = arith.constant 4 : index
    %c0_47 = arith.constant 0 : index
    %101 = vector.load %arg9[%c0_46, %c4, %c0_47] : memref<2x8x128xf32, #tpu.memory_space<vmem>>, vector<2x1x128xf32>
    %102 = vector.shape_cast %101 : vector<2x1x128xf32> to vector<2x128xf32>
    %cst_48 = arith.constant dense<0.000000e+00> : vector<2x128xf32>
    %103 = tpu.matmul %97, %9, %cst_48 {dimension_numbers = #tpu.dot_dimension_numbers<[1], [0], [0], [1], [0, 0, 1, 1], [], []>} : vector<2x32xf32>, vector<32x128xf32>, vector<2x128xf32> -> vector<2x128xf32>
    %104 = arith.addf %102, %103 : vector<2x128xf32>
    %105 = arith.negf %104 : vector<2x128xf32>
    %106 = math.exp %105 : vector<2x128xf32>
    %cst_49 = arith.constant 1.000000e+00 : f32
    %107 = vector.broadcast %cst_49 : f32 to vector<2x128xf32>
    %108 = arith.addf %107, %106 : vector<2x128xf32>
    %109 = arith.divf %107, %108 : vector<2x128xf32>
    %110 = math.tanh %104 : vector<2x128xf32>
    %111 = vector.extract_strided_slice %109 {offsets = [0, 0], sizes = [2, 32], strides = [1, 1]} : vector<2x128xf32> to vector<2x32xf32>
    %112 = vector.extract_strided_slice %109 {offsets = [0, 32], sizes = [2, 32], strides = [1, 1]} : vector<2x128xf32> to vector<2x32xf32>
    %113 = vector.extract_strided_slice %110 {offsets = [0, 64], sizes = [2, 32], strides = [1, 1]} : vector<2x128xf32> to vector<2x32xf32>
    %114 = vector.extract_strided_slice %109 {offsets = [0, 96], sizes = [2, 32], strides = [1, 1]} : vector<2x128xf32> to vector<2x32xf32>
    %115 = arith.mulf %112, %95 : vector<2x32xf32>
    %116 = arith.mulf %111, %113 : vector<2x32xf32>
    %117 = arith.addf %115, %116 : vector<2x32xf32>
    %118 = math.tanh %117 : vector<2x32xf32>
    %119 = arith.mulf %114, %118 : vector<2x32xf32>
    %c0_50 = arith.constant 0 : index
    %c4_51 = arith.constant 4 : index
    %c0_52 = arith.constant 0 : index
    %120 = vector.load %arg10[%c0_50, %c4_51, %c0_52] : memref<2x8x32xf32, #tpu.memory_space<vmem>>, vector<2x1x32xf32>
    %121 = vector.shape_cast %120 : vector<2x1x32xf32> to vector<2x32xf32>
    %122 = vector.shape_cast %119 : vector<2x32xf32> to vector<2x1x32xf32>
    tpu.vector_store %arg10[%c0_50, %c4_51, %c0_52], %122 {strides = array<i32>} : memref<2x8x32xf32, #tpu.memory_space<vmem>>, vector<2x1x32xf32>,
    %c0_53 = arith.constant 0 : index
    %c5 = arith.constant 5 : index
    %c0_54 = arith.constant 0 : index
    %123 = vector.load %arg9[%c0_53, %c5, %c0_54] : memref<2x8x128xf32, #tpu.memory_space<vmem>>, vector<2x1x128xf32>
    %124 = vector.shape_cast %123 : vector<2x1x128xf32> to vector<2x128xf32>
    %cst_55 = arith.constant dense<0.000000e+00> : vector<2x128xf32>
    %125 = tpu.matmul %119, %9, %cst_55 {dimension_numbers = #tpu.dot_dimension_numbers<[1], [0], [0], [1], [0, 0, 1, 1], [], []>} : vector<2x32xf32>, vector<32x128xf32>, vector<2x128xf32> -> vector<2x128xf32>
    %126 = arith.addf %124, %125 : vector<2x128xf32>
    %127 = arith.negf %126 : vector<2x128xf32>
    %128 = math.exp %127 : vector<2x128xf32>
    %cst_56 = arith.constant 1.000000e+00 : f32
    %129 = vector.broadcast %cst_56 : f32 to vector<2x128xf32>
    %130 = arith.addf %129, %128 : vector<2x128xf32>
    %131 = arith.divf %129, %130 : vector<2x128xf32>
    %132 = math.tanh %126 : vector<2x128xf32>
    %133 = vector.extract_strided_slice %131 {offsets = [0, 0], sizes = [2, 32], strides = [1, 1]} : vector<2x128xf32> to vector<2x32xf32>
    %134 = vector.extract_strided_slice %131 {offsets = [0, 32], sizes = [2, 32], strides = [1, 1]} : vector<2x128xf32> to vector<2x32xf32>
    %135 = vector.extract_strided_slice %132 {offsets = [0, 64], sizes = [2, 32], strides = [1, 1]} : vector<2x128xf32> to vector<2x32xf32>
    %136 = vector.extract_strided_slice %131 {offsets = [0, 96], sizes = [2, 32], strides = [1, 1]} : vector<2x128xf32> to vector<2x32xf32>
    %137 = arith.mulf %134, %117 : vector<2x32xf32>
    %138 = arith.mulf %133, %135 : vector<2x32xf32>
    %139 = arith.addf %137, %138 : vector<2x32xf32>
    %140 = math.tanh %139 : vector<2x32xf32>
    %141 = arith.mulf %136, %140 : vector<2x32xf32>
    %c0_57 = arith.constant 0 : index
    %c5_58 = arith.constant 5 : index
    %c0_59 = arith.constant 0 : index
    %142 = vector.load %arg10[%c0_57, %c5_58, %c0_59] : memref<2x8x32xf32, #tpu.memory_space<vmem>>, vector<2x1x32xf32>
    %143 = vector.shape_cast %142 : vector<2x1x32xf32> to vector<2x32xf32>
    %144 = vector.shape_cast %141 : vector<2x32xf32> to vector<2x1x32xf32>
    tpu.vector_store %arg10[%c0_57, %c5_58, %c0_59], %144 {strides = array<i32>} : memref<2x8x32xf32, #tpu.memory_space<vmem>>, vector<2x1x32xf32>,
    %c0_60 = arith.constant 0 : index
    %c6 = arith.constant 6 : index
    %c0_61 = arith.constant 0 : index
    %145 = vector.load %arg9[%c0_60, %c6, %c0_61] : memref<2x8x128xf32, #tpu.memory_space<vmem>>, vector<2x1x128xf32>
    %146 = vector.shape_cast %145 : vector<2x1x128xf32> to vector<2x128xf32>
    %cst_62 = arith.constant dense<0.000000e+00> : vector<2x128xf32>
    %147 = tpu.matmul %141, %9, %cst_62 {dimension_numbers = #tpu.dot_dimension_numbers<[1], [0], [0], [1], [0, 0, 1, 1], [], []>} : vector<2x32xf32>, vector<32x128xf32>, vector<2x128xf32> -> vector<2x128xf32>
    %148 = arith.addf %146, %147 : vector<2x128xf32>
    %149 = arith.negf %148 : vector<2x128xf32>
    %150 = math.exp %149 : vector<2x128xf32>
    %cst_63 = arith.constant 1.000000e+00 : f32
    %151 = vector.broadcast %cst_63 : f32 to vector<2x128xf32>
    %152 = arith.addf %151, %150 : vector<2x128xf32>
    %153 = arith.divf %151, %152 : vector<2x128xf32>
    %154 = math.tanh %148 : vector<2x128xf32>
    %155 = vector.extract_strided_slice %153 {offsets = [0, 0], sizes = [2, 32], strides = [1, 1]} : vector<2x128xf32> to vector<2x32xf32>
    %156 = vector.extract_strided_slice %153 {offsets = [0, 32], sizes = [2, 32], strides = [1, 1]} : vector<2x128xf32> to vector<2x32xf32>
    %157 = vector.extract_strided_slice %154 {offsets = [0, 64], sizes = [2, 32], strides = [1, 1]} : vector<2x128xf32> to vector<2x32xf32>
    %158 = vector.extract_strided_slice %153 {offsets = [0, 96], sizes = [2, 32], strides = [1, 1]} : vector<2x128xf32> to vector<2x32xf32>
    %159 = arith.mulf %156, %139 : vector<2x32xf32>
    %160 = arith.mulf %155, %157 : vector<2x32xf32>
    %161 = arith.addf %159, %160 : vector<2x32xf32>
    %162 = math.tanh %161 : vector<2x32xf32>
    %163 = arith.mulf %158, %162 : vector<2x32xf32>
    %c0_64 = arith.constant 0 : index
    %c6_65 = arith.constant 6 : index
    %c0_66 = arith.constant 0 : index
    %164 = vector.load %arg10[%c0_64, %c6_65, %c0_66] : memref<2x8x32xf32, #tpu.memory_space<vmem>>, vector<2x1x32xf32>
    %165 = vector.shape_cast %164 : vector<2x1x32xf32> to vector<2x32xf32>
    %166 = vector.shape_cast %163 : vector<2x32xf32> to vector<2x1x32xf32>
    tpu.vector_store %arg10[%c0_64, %c6_65, %c0_66], %166 {strides = array<i32>} : memref<2x8x32xf32, #tpu.memory_space<vmem>>, vector<2x1x32xf32>,
    %c0_67 = arith.constant 0 : index
    %c7 = arith.constant 7 : index
    %c0_68 = arith.constant 0 : index
    %167 = vector.load %arg9[%c0_67, %c7, %c0_68] : memref<2x8x128xf32, #tpu.memory_space<vmem>>, vector<2x1x128xf32>
    %168 = vector.shape_cast %167 : vector<2x1x128xf32> to vector<2x128xf32>
    %cst_69 = arith.constant dense<0.000000e+00> : vector<2x128xf32>
    %169 = tpu.matmul %163, %9, %cst_69 {dimension_numbers = #tpu.dot_dimension_numbers<[1], [0], [0], [1], [0, 0, 1, 1], [], []>} : vector<2x32xf32>, vector<32x128xf32>, vector<2x128xf32> -> vector<2x128xf32>
    %170 = arith.addf %168, %169 : vector<2x128xf32>
    %171 = arith.negf %170 : vector<2x128xf32>
    %172 = math.exp %171 : vector<2x128xf32>
    %cst_70 = arith.constant 1.000000e+00 : f32
    %173 = vector.broadcast %cst_70 : f32 to vector<2x128xf32>
    %174 = arith.addf %173, %172 : vector<2x128xf32>
    %175 = arith.divf %173, %174 : vector<2x128xf32>
    %176 = math.tanh %170 : vector<2x128xf32>
    %177 = vector.extract_strided_slice %175 {offsets = [0, 0], sizes = [2, 32], strides = [1, 1]} : vector<2x128xf32> to vector<2x32xf32>
    %178 = vector.extract_strided_slice %175 {offsets = [0, 32], sizes = [2, 32], strides = [1, 1]} : vector<2x128xf32> to vector<2x32xf32>
    %179 = vector.extract_strided_slice %176 {offsets = [0, 64], sizes = [2, 32], strides = [1, 1]} : vector<2x128xf32> to vector<2x32xf32>
    %180 = vector.extract_strided_slice %175 {offsets = [0, 96], sizes = [2, 32], strides = [1, 1]} : vector<2x128xf32> to vector<2x32xf32>
    %181 = arith.mulf %178, %161 : vector<2x32xf32>
    %182 = arith.mulf %177, %179 : vector<2x32xf32>
    %183 = arith.addf %181, %182 : vector<2x32xf32>
    %184 = math.tanh %183 : vector<2x32xf32>
    %185 = arith.mulf %180, %184 : vector<2x32xf32>
    %c0_71 = arith.constant 0 : index
    %c7_72 = arith.constant 7 : index
    %c0_73 = arith.constant 0 : index
    %186 = vector.load %arg10[%c0_71, %c7_72, %c0_73] : memref<2x8x32xf32, #tpu.memory_space<vmem>>, vector<2x1x32xf32>
    %187 = vector.shape_cast %186 : vector<2x1x32xf32> to vector<2x32xf32>
    %188 = vector.shape_cast %185 : vector<2x32xf32> to vector<2x1x32xf32>
    tpu.vector_store %arg10[%c0_71, %c7_72, %c0_73], %188 {strides = array<i32>} : memref<2x8x32xf32, #tpu.memory_space<vmem>>, vector<2x1x32xf32>,
    %c0_74 = arith.constant 0 : index
    %c0_75 = arith.constant 0 : index
    %c0_76 = arith.constant 0 : index
    %189 = vector.load %arg10[%c0_74, %c0_75, %c0_76] : memref<2x8x32xf32, #tpu.memory_space<vmem>>, vector<2x8x32xf32>
    %190 = vector.shape_cast %189 : vector<2x8x32xf32> to vector<16x32xf32>
    %cst_77 = arith.constant dense<0.000000e+00> : vector<16x16xf32>
    %191 = tpu.matmul %190, %10, %cst_77 {dimension_numbers = #tpu.dot_dimension_numbers<[1], [0], [0], [1], [0, 0, 1, 1], [], []>} : vector<16x32xf32>, vector<32x16xf32>, vector<16x16xf32> -> vector<16x16xf32>
    %c0_78 = arith.constant 0 : index
    %c0_79 = arith.constant 0 : index
    %192 = vector.load %arg5[%c0_78, %c0_79] : memref<1x16xf32, #tpu.memory_space<vmem>>, vector<1x16xf32>
    %193 = vector.broadcast %192 : vector<1x16xf32> to vector<16x16xf32>
    %194 = arith.addf %191, %193 : vector<16x16xf32>
    %195 = vector.shape_cast %194 : vector<16x16xf32> to vector<2x8x16xf32>
    %c0_80 = arith.constant 0 : index
    %c0_81 = arith.constant 0 : index
    %c0_82 = arith.constant 0 : index
    %196 = vector.load %arg8[%c0_80, %c0_81, %c0_82] : memref<2x8x16xf32, #tpu.memory_space<vmem>>, vector<2x8x16xf32>
    tpu.vector_store %arg8[%c0_80, %c0_81, %c0_82], %195 {strides = array<i32>} : memref<2x8x16xf32, #tpu.memory_space<vmem>>, vector<2x8x16xf32>,
    return
  }
}

</mosaic_0001>

<bundles_post_ra>
// kernel: tpu_custom_call.1
= control target key start
LH: loop header
LB: loop body
LE: loop exit
PB: predicated region body
PF: predicated region fallthrough
CT: control target
= control target key end

     0   :  { %13 = vsyncpa [#allocation5], 0  ;;  %s1769_s0 = inlined_call_operand.vmem [shape: f32[2,8,16], index: 0, kind: input, shape index: {}]   ;;  %s1770_s1 = inlined_call_operand.hbm [shape: f32[16,128], index: 1, kind: input, shape index: {}]   ;;  %s1771_s2 = inlined_call_operand.vmem [shape: f32[32,128], index: 2, kind: input, shape index: {}]   ;;  %s1772_s3 = inlined_call_operand.hbm [shape: f32[1,128], index: 3, kind: input, shape index: {}]   ;;  %s1773_s4 = inlined_call_operand.vmem [shape: f32[32,16], index: 4, kind: input, shape index: {}]   ;;  %s1774_s5 = inlined_call_operand.hbm [shape: f32[1,16], index: 5, kind: input, shape index: {}]   ;;  %s1775_s6 = inlined_call_operand.vmem [shape: f32[2,32], index: 6, kind: input, shape index: {}]   ;;  %s1776_s7 = inlined_call_operand.vmem [shape: f32[2,32], index: 7, kind: input, shape index: {}]   ;;  %s1777_s8 = inlined_call_operand.hbm [shape: f32[2,8,16], index: 8, kind: output, shape index: {}]  }
   0x1   :  { %14 = vsyncpa [#allocation8], 0  ;;  %s38_s29 = sshll.u32 %s1772_s3, 4  ;;  %s39_s29 = int_to_ptr.hbm [resolvable:$true] %s38_s29 }
   0x2   :  { %15 = vsyncpa [#allocation6], 0  ;;  %s1400_s30 = smov [#allocation7]   ;;  %s22_s12 = sshll.u32 %s1770_s1, 4  ;;  %s23_s12 = int_to_ptr.hbm [resolvable:$true] %s22_s12 }
   0x3   :  { %s40_s9 = sshll.u32 %s1400_s30, 4  ;;  %s1401_s13 = smov [#allocation4]   ;;  %s41_s9 = int_to_ptr.vmem [resolvable:$true] %s40_s9 }
   0x4   :  { %43 = dma.hbm_to_vmem [thread:$0]  %s39_s29, 16, %s41_s9, [#allocation8]  }
   0x5   :  { %s24_s14 = sshll.u32 %s1401_s13, 4  ;;  %s1402_s15 = smov 128   ;;  %s25_s14 = int_to_ptr.vmem [resolvable:$true] %s24_s14 }
   0x6   :  { %s1403_s16 = smov 8   ;;  %s51_s18 = sshll.u32 %s1774_s5, 4  ;;  %s52_s18 = int_to_ptr.hbm [resolvable:$true] %s51_s18 }
   0x7   :  { %30 = dma.hbm_to_vmem [thread:$0]  %s23_s12, 256, %s25_s14, [#allocation5], %s1402_s15, %s1402_s15, %s1403_s16  }
   0x8   :  { %s1404_s19 = smov [#allocation9]  }
   0x9   :  { %s53_s20 = sshll.u32 %s1404_s19, 4  ;;  %s54_s20 = int_to_ptr.vmem [resolvable:$true] %s53_s20 }
   0xa   :  { %56 = dma.hbm_to_vmem [thread:$0]  %s52_s18, 16, %s54_s20, [#allocation8]  }
   0xb   :  { %1394 = dma.done.wait [#allocation5], 256  }
   0xc   :  { %1395 = vsyncadd [#allocation5], 4294967040 }
   0xd   :  { %1396 = dma.done.wait [#allocation8], 32  }
   0xe   :  { %1397 = vsyncadd [#allocation8], 4294967264  ;;  %v76_v0 = vld [vmem:[#allocation4 + $0x8] sm:$0xff]  ;;  %v75_v1 = vld [vmem:[#allocation4] sm:$0xff]  ;;  %vm81_vm0 = vcmask 130048   ;;  %vm125_vm1 = vcmask 261120  }
   0xf   :  { %102 = vmatpush.msra.mxu0 %v76_v0  ;;  %v73_v2 = vld [vmem:[%s1769_s0] sm:$0xff]  ;;  %v1471_v3 = vld [vmem:[%s1771_s2 + $0x18] sm:$0xff]  ;;  %v1476_v4 = vld [vmem:[%s1771_s2 + $0x10] sm:$0xff]  ;;  %s1405_s10 = smov 32   ;;  %vm251_vm10 = vcmask 1041409   ;;  %s1118_s22 = sshll.u32 %s1777_s8, 4  ;;  %s1119_s22 = int_to_ptr.hbm [resolvable:$true] %s1118_s22 }
  0x10   :  { %141 = vmatpush.msra.mxu1 %v1471_v3  ;;  %269 = vmatpush.msra.mxu3 %v1471_v3  ;;  %v1483_v5 = vld [vmem:[%s1771_s2 + $0x8] sm:$0xff]  ;;  %v122_v6 = vld [vmem:[%s1776_s7] sm:$0x3]  ;;  %v1168_v11 = vld [vmem:[#allocation7] ss:$0 sm:$0xff] }
  0x11   :  { %103 = vmatpush.msra.mxu0 %v75_v1  ;;  %623 = vmatpush.msra.mxu2 %v1471_v3  ;;  %v196_v7 = vrot.slane %v122_v6, 1  ;;  %v1494_v8 = vld [vmem:[%s1771_s2] sm:$0xff]  ;;  %v74_v10 = vld [vmem:[%s1769_s0 + $0x8] sm:$0xff]  ;;  %s1406_s0 = smov 64  }
  0x12   :  { %1132 = vmatmul.msk.f32.vlgmr.msra.gmra.mxu0 %vm81_vm0, %v73_v2  ;;  %142 = vmatpush.msra.mxu1 %v1476_v4  ;;  %v121_v9 = vld [vmem:[%s1775_s6] sm:$0x3] }
  0x13   :  { %270 = vmatpush.msra.mxu3 %v1476_v4  ;;  %624 = vmatpush.msra.mxu2 %v1476_v4 }
  0x14   :  { %143 = vmatpush.msra.mxu1 %v1483_v5  ;;  %199 = vrot.lane.b32.xlu1 %v196_v7, %s1405_s10 }
  0x15   :  { %271 = vmatpush.msra.mxu3 %v1483_v5  ;;  %625 = vmatpush.msra.mxu2 %v1483_v5 }
  0x16   :  { %144 = vmatpush.msra.mxu1 %v1494_v8  ;;  %859 = vmatpush.msrb.mxu0 %v1471_v3 }
  0x17   :  { %1134 = vmatmul.msk.f32.vlgmr.msra.gmra.mxu1 %vm125_vm1, %v121_v9  ;;  %272 = vmatpush.msra.mxu3 %v1494_v8 }
  0x18   :  { %505 = vmatpush.msrb.mxu1 %v1471_v3  ;;  %626 = vmatpush.msra.mxu2 %v1494_v8 }
  0x19   :  { %387 = vmatpush.msrb.mxu3 %v1471_v3  ;;  %860 = vmatpush.msrb.mxu0 %v1476_v4 }
  0x1a   :  { %1133 = vmatmul.msk.f32.gmra.mxu0 %vm81_vm0, %v74_v10  ;;  %506 = vmatpush.msrb.mxu1 %v1476_v4 }
  0x1b   :  { %388 = vmatpush.msrb.mxu3 %v1476_v4  ;;  %861 = vmatpush.msrb.mxu0 %v1483_v5 }
  0x1c   :  { %197 = vrot.lane.b32.xlu1 %v122_v6, %s1405_s10  ;;  %507 = vmatpush.msrb.mxu1 %v1483_v5 }
  0x1d   :  { %389 = vmatpush.msrb.mxu3 %v1483_v5  ;;  %862 = vmatpush.msrb.mxu0 %v1494_v8 }
  0x1e   :  { %508 = vmatpush.msrb.mxu1 %v1494_v8 }
  0x1f   :  { %390 = vmatpush.msrb.mxu3 %v1494_v8 }
  0x20   :  { %977 = vmatpush.msra.mxu1 %v1471_v3 }
  0x22   :  { %978 = vmatpush.msra.mxu1 %v1476_v4 }
  0x24   :  { %979 = vmatpush.msra.mxu1 %v1483_v5 }
  0x26   :  { %980 = vmatpush.msra.mxu1 %v1494_v8 }
  0x86   :  { %v200_v54 = vpop.permute.xlu1 %199 }
  0x8e   :  { %v198_v58 = vpop.permute.xlu1 %197 }
  0x8f   :  { %v105_v12 = vpop.f32.mrf.mxu0 }
  0x90   :  { %v106_v13 = vadd.f32 %v1168_v11, %v105_v12 }
  0x92   :  { %111 = vst [vmem:[#allocation2] sm:$0xff] %v106_v13 }
  0x94   :  { %v146_v16 = vpop.f32.mrf.mxu1 }
  0x95   :  { %v150_v17 = vrot.slane %v146_v16, 1 }
  0x97   :  { %v108_v14 = vpop.f32.mrf.mxu0 }
  0x98   :  { %v109_v15 = vadd.f32 %v1168_v11, %v108_v14 }
  0x99   :  { %v123_v20 = vld [vmem:[#allocation2] sm:$0x1]  ;;  %v248_v11 = vld [vmem:[#allocation2 + $0x1] sm:$0x1] }
  0x9a   :  { %112 = vst [vmem:[#allocation2 + $0x8] sm:$0xff] %v109_v15  ;;  %v153_v21 = vadd.f32 %v146_v16, %v123_v20 }
  0x9c   :  { %v1135_v25 = vmul.f32 -1.442695, %v153_v21 }
  0xa1   :  { %v124_v18 = vld [vmem:[#allocation2 + $0x8] sm:$0x1]  ;;  %v249_v15 = vld [vmem:[#allocation2 + $0x9] sm:$0x1] }
  0xa2   :  { %v154_v19 = vadd.f32 %v150_v17, %v124_v18 }
  0xa4   :  { %1170 = vtanh.f32 %v154_v19  ;;  %v1136_v24 = vmul.f32 -1.442695, %v154_v19 }
  0xa5   :  { %1172 = vtanh.f32 %v153_v21 }
  0xa6   :  { %1174 = vpow2.f32 %v1136_v24 }
  0xa7   :  { %1176 = vpow2.f32 %v1135_v25 }
  0xaa   :  { %v1171_v22 = vpop.eup %1170 }
  0xab   :  { %209 = vrot.lane.b32.xlu0 %v1171_v22, %s1406_s0  ;;  %v1173_v23 = vpop.eup %1172 }
  0xac   :  { %v1175_v26 = vpop.eup %1174 }
  0xad   :  { %v162_v27 = vadd.f32 1.0, %v1175_v26  ;;  %v1177_v28 = vpop.eup %1176 }
  0xae   :  { %v161_v29 = vadd.f32 1.0, %v1177_v28 }
  0xaf   :  { %1178 = vrcp.f32 %v162_v27  ;;  %v189_v38 = vand.u32 2147483648, %v162_v27  ;;  %vm183_vm3 = vweird.f32 %v162_v27  ;;  %v187_v39 = vand.u32 2147483647, %v162_v27 }
  0xb0   :  { %1180 = vrcp.f32 %v161_v29  ;;  %v174_v47 = vand.u32 2147483648, %v161_v29  ;;  %vm168_vm7 = vweird.f32 %v161_v29  ;;  %v172_v48 = vand.u32 2147483647, %v161_v29 }
  0xb1   :  { %v190_v42 = vor.u32 1.1754944e-38, %v189_v38  ;;  %vm188_vm5 = vcmp.eq.f32.partialorder %v187_v39, 8.507059e+37 }
  0xb2   :  { %v175_v50 = vor.u32 1.1754944e-38, %v174_v47  ;;  %vm173_vm9 = vcmp.eq.f32.partialorder %v172_v48, 8.507059e+37 }
  0xb3   :  { %207 = vrot.lane.b32.xlu0 %v1173_v23, %s1406_s0 }
  0xb5   :  { %v1179_v30 = vpop.eup %1178 }
  0xb6   :  { %v179_v31 = vmul.f32 %v1179_v30, %v162_v27  ;;  %v1181_v33 = vpop.eup %1180  ;;  %vm184_vm2 = vweird.f32 %v1179_v30 }
  0xb7   :  { %v164_v35 = vmul.f32 %v1181_v33, %v161_v29  ;;  %vm185_vm4 = vmor %vm183_vm3, %vm184_vm2  ;;  %vm169_vm6 = vweird.f32 %v1181_v33 }
  0xb8   :  { %v180_v32 = vsub.f32 1.0, %v179_v31  ;;  %vm170_vm8 = vmor %vm168_vm7, %vm169_vm6 }
  0xb9   :  { %v165_v37 = vsub.f32 1.0, %v164_v35 }
  0xba   :  { %v181_v34 = vmul.f32 %v1179_v30, %v180_v32 }
  0xbb   :  { %v166_v41 = vmul.f32 %v1181_v33, %v165_v37 }
  0xbc   :  { %v182_v36 = vadd.f32 %v1179_v30, %v181_v34 }
  0xbd   :  { %v167_v45 = vadd.f32 %v1181_v33, %v166_v41 }
  0xbe   :  { %v186_v40 = vsel %vm185_vm4, %v1179_v30, %v182_v36 }
  0xbf   :  { %v191_v43 = vsel %vm188_vm5, %v190_v42, %v186_v40  ;;  %v171_v49 = vsel %vm170_vm8, %v1181_v33, %v167_v45 }
  0xc0   :  { %v176_v51 = vsel %vm173_vm9, %v175_v50, %v171_v49  ;;  %v204_v55 = vmul.f32 %v200_v54, %v191_v43 }
  0xc1   :  { %v203_v59 = vmul.f32 %v198_v58, %v176_v51 }
 0x11d   :  { %v210_v44 = vpop.permute.xlu0 %209 }
 0x11e   :  { %v214_v46 = vmul.f32 %v210_v44, %v191_v43 }
 0x120   :  { %219 = vrot.lane.b32.xlu2 %v214_v46, %s1405_s10 }
 0x125   :  { %v208_v52 = vpop.permute.xlu0 %207 }
 0x126   :  { %v213_v53 = vmul.f32 %v208_v52, %v176_v51 }
 0x128   :  { %217 = vrot.lane.b32.xlu2 %v213_v53, %s1405_s10 }
 0x17a   :  { %v220_v56 = vpop.permute.xlu2 %219 }
 0x17b   :  { %v1534_v57 = vadd.f32 %v220_v56, %v204_v55 }
 0x17d   :  { %1182 = vtanh.f32 %v1534_v57 }
 0x182   :  { %v218_v60 = vpop.permute.xlu2 %217 }
 0x183   :  { %v1183_v61 = vpop.eup %1182  ;;  %v1537_v62 = vadd.f32 %v218_v60, %v203_v59  ;;  %v367_v60 = vld [vmem:[#allocation2 + $0x2] sm:$0x1] }
 0x184   :  { %231 = vrot.lane.b32.xlu0 %v1183_v61, %s1406_s0 }
 0x185   :  { %1184 = vtanh.f32 %v1537_v62 }
 0x18b   :  { %v1185_v63 = vpop.eup %1184 }
 0x18c   :  { %229 = vrot.lane.b32.xlu1 %v1185_v63, %s1406_s0 }
 0x1f6   :  { %v232_v0 = vpop.permute.xlu0 %231 }
 0x1f7   :  { %v1542_v1 = vmul.f32 %v232_v0, %v191_v43  ;;  %v368_v0 = vld [vmem:[#allocation2 + $0xa] sm:$0x1] }
 0x1f9   :  { %v250_v6 = vrot.slane %v1542_v1, 7 }
 0x1fe   :  { %v230_v2 = vpop.permute.xlu1 %229 }
 0x1ff   :  { %v1545_v7 = vmul.f32 %v230_v2, %v176_v51 }
 0x201   :  { %v252_v9 = vsel %vm251_vm10, %v250_v6, %v1545_v7 }
 0x202   :  { %253 = vrot.lane.b32.xlu2 %v252_v9, %s1405_s10 }
 0x25c   :  { %v254_v10 = vpop.permute.xlu2 %253 }
 0x25d   :  { %1137 = vmatmul.msk.f32.vlgmr.msra.gmra.mxu3 %vm125_vm1, %v254_v10 }
 0x25e   :  { %741 = vmatpush.msra.mxu3 %v1471_v3 }
 0x260   :  { %742 = vmatpush.msra.mxu3 %v1476_v4 }
 0x262   :  { %743 = vmatpush.msra.mxu3 %v1483_v5 }
 0x264   :  { %744 = vmatpush.msra.mxu3 %v1494_v8 }
 0x2e0   :  { %v274_v12 = vpop.f32.mrf.mxu3 }
 0x2e1   :  { %v278_v13 = vrot.slane %v274_v12, 1  ;;  %v281_v14 = vadd.f32 %v274_v12, %v248_v11 }
 0x2e3   :  { %v282_v16 = vadd.f32 %v278_v13, %v249_v15  ;;  %1186 = vtanh.f32 %v281_v14  ;;  %v1138_v3 = vmul.f32 -1.442695, %v281_v14 }
 0x2e5   :  { %1188 = vtanh.f32 %v282_v16  ;;  %v1139_v4 = vmul.f32 -1.442695, %v282_v16 }
 0x2e6   :  { %1190 = vpow2.f32 %v1138_v3 }
 0x2e7   :  { %1192 = vpow2.f32 %v1139_v4 }
 0x2e9   :  { %v1187_v17 = vpop.eup %1186 }
 0x2ea   :  { %327 = vrot.lane.b32.xlu1 %v1187_v17, %s1406_s0 }
 0x2eb   :  { %v1189_v18 = vpop.eup %1188 }
 0x2ec   :  { %329 = vrot.lane.b32.xlu0 %v1189_v18, %s1406_s0  ;;  %v1191_v5 = vpop.eup %1190 }
 0x2ed   :  { %v1193_v8 = vpop.eup %1192  ;;  %v289_v19 = vadd.f32 1.0, %v1191_v5 }
 0x2ee   :  { %v290_v20 = vadd.f32 1.0, %v1193_v8 }
 0x2ef   :  { %1194 = vrcp.f32 %v289_v19  ;;  %v302_v30 = vand.u32 2147483648, %v289_v19  ;;  %vm296_vm12 = vweird.f32 %v289_v19  ;;  %v300_v31 = vand.u32 2147483647, %v289_v19 }
 0x2f0   :  { %1196 = vrcp.f32 %v290_v20  ;;  %v317_v34 = vand.u32 2147483648, %v290_v20  ;;  %vm311_vm15 = vweird.f32 %v290_v20  ;;  %v315_v36 = vand.u32 2147483647, %v290_v20 }
 0x2f1   :  { %v303_v35 = vor.u32 1.1754944e-38, %v302_v30  ;;  %vm301_vm2 = vcmp.eq.f32.partialorder %v300_v31, 8.507059e+37 }
 0x2f2   :  { %v318_v41 = vor.u32 1.1754944e-38, %v317_v34  ;;  %vm316_vm4 = vcmp.eq.f32.partialorder %v315_v36, 8.507059e+37 }
 0x2f5   :  { %v1195_v21 = vpop.eup %1194 }
 0x2f6   :  { %v1197_v22 = vpop.eup %1196  ;;  %v292_v23 = vmul.f32 %v1195_v21, %v289_v19  ;;  %vm297_vm11 = vweird.f32 %v1195_v21 }
 0x2f7   :  { %v307_v24 = vmul.f32 %v1197_v22, %v290_v20  ;;  %vm298_vm13 = vmor %vm296_vm12, %vm297_vm11  ;;  %vm312_vm14 = vweird.f32 %v1197_v22 }
 0x2f8   :  { %v293_v25 = vsub.f32 1.0, %v292_v23  ;;  %vm313_vm3 = vmor %vm311_vm15, %vm312_vm14 }
 0x2f9   :  { %v308_v26 = vsub.f32 1.0, %v307_v24 }
 0x2fa   :  { %v294_v27 = vmul.f32 %v1195_v21, %v293_v25 }
 0x2fb   :  { %v309_v28 = vmul.f32 %v1197_v22, %v308_v26 }
 0x2fc   :  { %v295_v29 = vadd.f32 %v1195_v21, %v294_v27 }
 0x2fd   :  { %v310_v32 = vadd.f32 %v1197_v22, %v309_v28 }
 0x2fe   :  { %v299_v33 = vsel %vm298_vm13, %v1195_v21, %v295_v29 }
 0x2ff   :  { %v304_v38 = vsel %vm301_vm2, %v303_v35, %v299_v33  ;;  %v314_v39 = vsel %vm313_vm3, %v1197_v22, %v310_v32 }
 0x300   :  { %v319_v43 = vsel %vm316_vm4, %v318_v41, %v314_v39  ;;  %v323_v49 = vmul.f32 %v304_v38, %v1537_v62 }
 0x301   :  { %v324_v45 = vmul.f32 %v319_v43, %v1534_v57 }
 0x35c   :  { %v328_v37 = vpop.permute.xlu1 %327 }
 0x35d   :  { %v333_v40 = vmul.f32 %v328_v37, %v304_v38 }
 0x35e   :  { %v330_v42 = vpop.permute.xlu0 %329 }
 0x35f   :  { %337 = vrot.lane.b32.xlu0 %v333_v40, %s1405_s10  ;;  %v334_v44 = vmul.f32 %v330_v42, %v319_v43 }
 0x361   :  { %339 = vrot.lane.b32.xlu2 %v334_v44, %s1405_s10 }
 0x3bb   :  { %v340_v46 = vpop.permute.xlu2 %339 }
 0x3bc   :  { %v1560_v47 = vadd.f32 %v340_v46, %v324_v45 }
 0x3be   :  { %1198 = vtanh.f32 %v1560_v47 }
 0x3c4   :  { %v1199_v48 = vpop.eup %1198 }
 0x3c5   :  { %351 = vrot.lane.b32.xlu1 %v1199_v48, %s1406_s0 }
 0x3d1   :  { %v338_v50 = vpop.permute.xlu0 %337 }
 0x3d2   :  { %v1565_v51 = vadd.f32 %v338_v50, %v323_v49 }
 0x3d4   :  { %1200 = vtanh.f32 %v1565_v51 }
 0x3da   :  { %v1201_v52 = vpop.eup %1200 }
 0x3db   :  { %349 = vrot.lane.b32.xlu2 %v1201_v52, %s1406_s0 }
 0x435   :  { %v350_v53 = vpop.permute.xlu2 %349 }
 0x436   :  { %v1571_v56 = vmul.f32 %v350_v53, %v304_v38 }
 0x437   :  { %v352_v54 = vpop.permute.xlu1 %351 }
 0x438   :  { %v1569_v55 = vmul.f32 %v352_v54, %v319_v43 }
 0x43a   :  { %v369_v57 = vrot.slane %v1569_v55, 7 }
 0x43c   :  { %v370_v58 = vsel %vm251_vm10, %v369_v57, %v1571_v56  ;;  %v486_v57 = vld [vmem:[#allocation2 + $0xb] sm:$0x1] }
 0x43d   :  { %371 = vrot.lane.b32.xlu0 %v370_v58, %s1405_s10 }
 0x4af   :  { %v372_v59 = vpop.permute.xlu0 %371 }
 0x4b0   :  { %1140 = vmatmul.msk.f32.vlgmr.msrb.gmra.mxu3 %vm125_vm1, %v372_v59 }
 0x533   :  { %v392_v61 = vpop.f32.mrf.mxu3 }
 0x534   :  { %v396_v62 = vrot.slane %v392_v61, 1  ;;  %v399_v63 = vadd.f32 %v392_v61, %v367_v60 }
 0x536   :  { %v400_v2 = vadd.f32 %v396_v62, %v368_v0  ;;  %1202 = vtanh.f32 %v399_v63  ;;  %v1141_v10 = vmul.f32 -1.442695, %v399_v63 }
 0x538   :  { %1204 = vtanh.f32 %v400_v2  ;;  %v1142_v15 = vmul.f32 -1.442695, %v400_v2 }
 0x539   :  { %1206 = vpow2.f32 %v1141_v10 }
 0x53c   :  { %v1203_v6 = vpop.eup %1202 }
 0x53d   :  { %445 = vrot.lane.b32.xlu2 %v1203_v6, %s1406_s0 }
 0x53e   :  { %v1205_v9 = vpop.eup %1204 }
 0x53f   :  { %447 = vrot.lane.b32.xlu1 %v1205_v9, %s1406_s0  ;;  %v1207_v11 = vpop.eup %1206 }
 0x540   :  { %v407_v12 = vadd.f32 1.0, %v1207_v11 }
 0x542   :  { %1208 = vrcp.f32 %v407_v12  ;;  %v420_v4 = vand.u32 2147483648, %v407_v12  ;;  %vm414_vm6 = vweird.f32 %v407_v12  ;;  %v418_v8 = vand.u32 2147483647, %v407_v12 }
 0x543   :  { %1210 = vpow2.f32 %v1142_v15 }
 0x544   :  { %v421_v20 = vor.u32 1.1754944e-38, %v420_v4  ;;  %vm419_vm8 = vcmp.eq.f32.partialorder %v418_v8, 8.507059e+37 }
 0x548   :  { %v1209_v13 = vpop.eup %1208 }
 0x549   :  { %v410_v14 = vmul.f32 %v1209_v13, %v407_v12  ;;  %v1211_v18 = vpop.eup %1210  ;;  %vm415_vm5 = vweird.f32 %v1209_v13 }
 0x54a   :  { %v408_v5 = vadd.f32 1.0, %v1211_v18  ;;  %vm416_vm7 = vmor %vm414_vm6, %vm415_vm5 }
 0x54b   :  { %v411_v16 = vsub.f32 1.0, %v410_v14 }
 0x54c   :  { %1212 = vrcp.f32 %v408_v5  ;;  %v435_v29 = vand.u32 2147483648, %v408_v5  ;;  %vm429_vm11 = vweird.f32 %v408_v5  ;;  %v433_v30 = vand.u32 2147483647, %v408_v5 }
 0x54d   :  { %v412_v17 = vmul.f32 %v1209_v13, %v411_v16 }
 0x54e   :  { %v436_v32 = vor.u32 1.1754944e-38, %v435_v29  ;;  %vm434_vm13 = vcmp.eq.f32.partialorder %v433_v30, 8.507059e+37 }
 0x54f   :  { %v413_v3 = vadd.f32 %v1209_v13, %v412_v17 }
 0x551   :  { %v417_v19 = vsel %vm416_vm7, %v1209_v13, %v413_v3 }
 0x552   :  { %v422_v22 = vsel %vm419_vm8, %v421_v20, %v417_v19  ;;  %v1213_v24 = vpop.eup %1212 }
 0x553   :  { %v425_v25 = vmul.f32 %v1213_v24, %v408_v5  ;;  %vm430_vm9 = vweird.f32 %v1213_v24  ;;  %v441_v36 = vmul.f32 %v422_v22, %v1565_v51  ;;  %v485_v51 = vld [vmem:[#allocation2 + $0x3] sm:$0x1] }
 0x554   :  { %vm431_vm12 = vmor %vm429_vm11, %vm430_vm9 }
 0x555   :  { %v426_v26 = vsub.f32 1.0, %v425_v25 }
 0x557   :  { %v427_v27 = vmul.f32 %v1213_v24, %v426_v26 }
 0x559   :  { %v428_v28 = vadd.f32 %v1213_v24, %v427_v27 }
 0x55b   :  { %v432_v31 = vsel %vm431_vm12, %v1213_v24, %v428_v28 }
 0x55c   :  { %v437_v34 = vsel %vm434_vm13, %v436_v32, %v432_v31 }
 0x55d   :  { %v442_v40 = vmul.f32 %v437_v34, %v1560_v47 }
 0x597   :  { %v446_v21 = vpop.permute.xlu2 %445 }
 0x598   :  { %v451_v23 = vmul.f32 %v446_v21, %v422_v22 }
 0x59a   :  { %455 = vrot.lane.b32.xlu1 %v451_v23, %s1405_s10 }
 0x5b1   :  { %v448_v33 = vpop.permute.xlu1 %447 }
 0x5b2   :  { %v452_v35 = vmul.f32 %v448_v33, %v437_v34 }
 0x5b4   :  { %457 = vrot.lane.b32.xlu0 %v452_v35, %s1405_s10 }
 0x60c   :  { %v456_v37 = vpop.permute.xlu1 %455 }
 0x60d   :  { %v1583_v38 = vadd.f32 %v456_v37, %v441_v36 }
 0x60f   :  { %1214 = vtanh.f32 %v1583_v38 }
 0x615   :  { %v1215_v39 = vpop.eup %1214 }
 0x616   :  { %467 = vrot.lane.b32.xlu0 %v1215_v39, %s1406_s0 }
 0x626   :  { %v458_v41 = vpop.permute.xlu0 %457 }
 0x627   :  { %v1588_v42 = vadd.f32 %v458_v41, %v442_v40 }
 0x629   :  { %1216 = vtanh.f32 %v1588_v42 }
 0x62f   :  { %v1217_v43 = vpop.eup %1216 }
 0x630   :  { %469 = vrot.lane.b32.xlu2 %v1217_v43, %s1406_s0 }
 0x688   :  { %v468_v44 = vpop.permute.xlu0 %467 }
 0x689   :  { %v1594_v48 = vmul.f32 %v468_v44, %v422_v22  ;;  %v603_v44 = vld [vmem:[#allocation2 + $0x4] sm:$0x1] }
 0x68a   :  { %v470_v45 = vpop.permute.xlu2 %469 }
 0x68b   :  { %v1592_v46 = vmul.f32 %v470_v45, %v437_v34 }
 0x68d   :  { %v487_v49 = vrot.slane %v1592_v46, 7 }
 0x68f   :  { %v488_v50 = vsel %vm251_vm10, %v487_v49, %v1594_v48 }
 0x690   :  { %489 = vrot.lane.b32.xlu1 %v488_v50, %s1405_s10 }
 0x702   :  { %v490_v47 = vpop.permute.xlu1 %489 }
 0x703   :  { %1143 = vmatmul.msk.f32.vlgmr.msrb.gmra.mxu1 %vm125_vm1, %v490_v47  ;;  %v604_v47 = vld [vmem:[#allocation2 + $0xc] sm:$0x1] }
 0x780   :  { %v510_v52 = vpop.f32.mrf.mxu1 }
 0x781   :  { %v514_v53 = vrot.slane %v510_v52, 1  ;;  %v517_v54 = vadd.f32 %v510_v52, %v485_v51 }
 0x783   :  { %v518_v58 = vadd.f32 %v514_v53, %v486_v57  ;;  %1218 = vtanh.f32 %v517_v54  ;;  %v1144_v0 = vmul.f32 -1.442695, %v517_v54 }
 0x785   :  { %1220 = vtanh.f32 %v518_v58  ;;  %v1145_v61 = vmul.f32 -1.442695, %v518_v58 }
 0x787   :  { %1222 = vpow2.f32 %v1145_v61 }
 0x789   :  { %v1219_v59 = vpop.eup %1218 }
 0x78a   :  { %563 = vrot.lane.b32.xlu0 %v1219_v59, %s1406_s0 }
 0x78b   :  { %v1221_v60 = vpop.eup %1220 }
 0x78c   :  { %565 = vrot.lane.b32.xlu2 %v1221_v60, %s1406_s0 }
 0x78d   :  { %v1223_v62 = vpop.eup %1222 }
 0x78e   :  { %v526_v63 = vadd.f32 1.0, %v1223_v62 }
 0x790   :  { %1224 = vrcp.f32 %v526_v63  ;;  %v553_v14 = vand.u32 2147483648, %v526_v63  ;;  %vm547_vm15 = vweird.f32 %v526_v63  ;;  %v551_v15 = vand.u32 2147483647, %v526_v63 }
 0x791   :  { %1226 = vpow2.f32 %v1144_v0 }
 0x792   :  { %v554_v17 = vor.u32 1.1754944e-38, %v553_v14  ;;  %vm552_vm3 = vcmp.eq.f32.partialorder %v551_v15, 8.507059e+37 }
 0x796   :  { %v1225_v2 = vpop.eup %1224 }
 0x797   :  { %v543_v6 = vmul.f32 %v1225_v2, %v526_v63  ;;  %v1227_v10 = vpop.eup %1226  ;;  %vm548_vm14 = vweird.f32 %v1225_v2 }
 0x798   :  { %v525_v11 = vadd.f32 1.0, %v1227_v10  ;;  %vm549_vm2 = vmor %vm547_vm15, %vm548_vm14 }
 0x799   :  { %v544_v9 = vsub.f32 1.0, %v543_v6 }
 0x79a   :  { %1228 = vrcp.f32 %v525_v11  ;;  %v538_v22 = vand.u32 2147483648, %v525_v11  ;;  %vm532_vm5 = vweird.f32 %v525_v11  ;;  %v536_v23 = vand.u32 2147483647, %v525_v11 }
 0x79b   :  { %v545_v12 = vmul.f32 %v1225_v2, %v544_v9 }
 0x79c   :  { %v539_v25 = vor.u32 1.1754944e-38, %v538_v22  ;;  %vm537_vm7 = vcmp.eq.f32.partialorder %v536_v23, 8.507059e+37 }
 0x79d   :  { %v546_v13 = vadd.f32 %v1225_v2, %v545_v12 }
 0x79f   :  { %v550_v16 = vsel %vm549_vm2, %v1225_v2, %v546_v13 }
 0x7a0   :  { %v1229_v18 = vpop.eup %1228  ;;  %v555_v4 = vsel %vm552_vm3, %v554_v17, %v550_v16 }
 0x7a1   :  { %v528_v8 = vmul.f32 %v1229_v18, %v525_v11  ;;  %vm533_vm4 = vweird.f32 %v1229_v18  ;;  %v560_v32 = vmul.f32 %v555_v4, %v1588_v42 }
 0x7a2   :  { %vm534_vm6 = vmor %vm532_vm5, %vm533_vm4 }
 0x7a3   :  { %v529_v19 = vsub.f32 1.0, %v528_v8 }
 0x7a5   :  { %v530_v20 = vmul.f32 %v1229_v18, %v529_v19 }
 0x7a7   :  { %v531_v21 = vadd.f32 %v1229_v18, %v530_v20 }
 0x7a9   :  { %v535_v24 = vsel %vm534_vm6, %v1229_v18, %v531_v21 }
 0x7aa   :  { %v540_v27 = vsel %vm537_vm7, %v539_v25, %v535_v24 }
 0x7ab   :  { %v559_v29 = vmul.f32 %v540_v27, %v1583_v38 }
 0x7e6   :  { %v566_v3 = vpop.permute.xlu2 %565 }
 0x7e7   :  { %v570_v5 = vmul.f32 %v566_v3, %v555_v4 }
 0x7e9   :  { %575 = vrot.lane.b32.xlu1 %v570_v5, %s1405_s10 }
 0x7fc   :  { %v564_v26 = vpop.permute.xlu0 %563 }
 0x7fd   :  { %v569_v28 = vmul.f32 %v564_v26, %v540_v27 }
 0x7ff   :  { %573 = vrot.lane.b32.xlu2 %v569_v28, %s1405_s10 }
 0x859   :  { %v574_v30 = vpop.permute.xlu2 %573 }
 0x85a   :  { %v1606_v31 = vadd.f32 %v574_v30, %v559_v29 }
 0x85b   :  { %v576_v33 = vpop.permute.xlu1 %575 }
 0x85c   :  { %1230 = vtanh.f32 %v1606_v31  ;;  %v1610_v34 = vadd.f32 %v576_v33, %v560_v32 }
 0x85e   :  { %1232 = vtanh.f32 %v1610_v34 }
 0x862   :  { %v1231_v35 = vpop.eup %1230 }
 0x863   :  { %585 = vrot.lane.b32.xlu1 %v1231_v35, %s1406_s0 }
 0x864   :  { %v1233_v36 = vpop.eup %1232 }
 0x865   :  { %587 = vrot.lane.b32.xlu0 %v1233_v36, %s1406_s0 }
 0x8d5   :  { %v586_v37 = vpop.permute.xlu1 %585 }
 0x8d6   :  { %v1617_v40 = vmul.f32 %v586_v37, %v540_v27 }
 0x8d7   :  { %v588_v38 = vpop.permute.xlu0 %587 }
 0x8d8   :  { %v1615_v39 = vmul.f32 %v588_v38, %v555_v4 }
 0x8da   :  { %v605_v41 = vrot.slane %v1615_v39, 7 }
 0x8dc   :  { %v606_v42 = vsel %vm251_vm10, %v605_v41, %v1617_v40  ;;  %v721_v41 = vld [vmem:[#allocation2 + $0x5] sm:$0x1] }
 0x8dd   :  { %607 = vrot.lane.b32.xlu2 %v606_v42, %s1405_s10 }
 0x937   :  { %v608_v43 = vpop.permute.xlu2 %607 }
 0x938   :  { %1146 = vmatmul.msk.f32.vlgmr.msra.gmra.mxu2 %vm125_vm1, %v608_v43 }
 0x9bb   :  { %v628_v45 = vpop.f32.mrf.mxu2 }
 0x9bc   :  { %v632_v49 = vrot.slane %v628_v45, 1  ;;  %v635_v50 = vadd.f32 %v628_v45, %v603_v44  ;;  %v722_v45 = vld [vmem:[#allocation2 + $0xd] sm:$0x1] }
 0x9be   :  { %v636_v51 = vadd.f32 %v632_v49, %v604_v47  ;;  %1234 = vtanh.f32 %v635_v50  ;;  %v1147_v54 = vmul.f32 -1.442695, %v635_v50 }
 0x9c0   :  { %1236 = vtanh.f32 %v636_v51  ;;  %v1148_v57 = vmul.f32 -1.442695, %v636_v51 }
 0x9c1   :  { %1238 = vpow2.f32 %v1147_v54 }
 0x9c2   :  { %1240 = vpow2.f32 %v1148_v57 }
 0x9c4   :  { %v1235_v52 = vpop.eup %1234 }
 0x9c5   :  { %681 = vrot.lane.b32.xlu1 %v1235_v52, %s1406_s0 }
 0x9c6   :  { %v1237_v53 = vpop.eup %1236 }
 0x9c7   :  { %683 = vrot.lane.b32.xlu0 %v1237_v53, %s1406_s0  ;;  %v1239_v58 = vpop.eup %1238 }
 0x9c8   :  { %v1241_v59 = vpop.eup %1240  ;;  %v643_v60 = vadd.f32 1.0, %v1239_v58 }
 0x9c9   :  { %v644_v61 = vadd.f32 1.0, %v1241_v59 }
 0x9ca   :  { %1242 = vrcp.f32 %v643_v60  ;;  %v656_v13 = vand.u32 2147483648, %v643_v60  ;;  %vm650_vm9 = vweird.f32 %v643_v60  ;;  %v654_v14 = vand.u32 2147483647, %v643_v60 }
 0x9cb   :  { %1244 = vrcp.f32 %v644_v61  ;;  %v671_v17 = vand.u32 2147483648, %v644_v61  ;;  %vm665_vm13 = vweird.f32 %v644_v61  ;;  %v669_v3 = vand.u32 2147483647, %v644_v61 }
 0x9cc   :  { %v657_v18 = vor.u32 1.1754944e-38, %v656_v13  ;;  %vm655_vm14 = vcmp.eq.f32.partialorder %v654_v14, 8.507059e+37 }
 0x9cd   :  { %v672_v20 = vor.u32 1.1754944e-38, %v671_v17  ;;  %vm670_vm2 = vcmp.eq.f32.partialorder %v669_v3, 8.507059e+37 }
 0x9d0   :  { %v1243_v62 = vpop.eup %1242 }
 0x9d1   :  { %v1245_v63 = vpop.eup %1244  ;;  %v646_v0 = vmul.f32 %v1243_v62, %v643_v60  ;;  %vm651_vm8 = vweird.f32 %v1243_v62 }
 0x9d2   :  { %v661_v2 = vmul.f32 %v1245_v63, %v644_v61  ;;  %vm652_vm11 = vmor %vm650_vm9, %vm651_vm8  ;;  %vm666_vm12 = vweird.f32 %v1245_v63 }
 0x9d3   :  { %v647_v6 = vsub.f32 1.0, %v646_v0  ;;  %vm667_vm15 = vmor %vm665_vm13, %vm666_vm12 }
 0x9d4   :  { %v662_v9 = vsub.f32 1.0, %v661_v2 }
 0x9d5   :  { %v648_v10 = vmul.f32 %v1243_v62, %v647_v6 }
 0x9d6   :  { %v663_v11 = vmul.f32 %v1245_v63, %v662_v9 }
 0x9d7   :  { %v649_v12 = vadd.f32 %v1243_v62, %v648_v10 }
 0x9d8   :  { %v664_v15 = vadd.f32 %v1245_v63, %v663_v11 }
 0x9d9   :  { %v653_v16 = vsel %vm652_vm11, %v1243_v62, %v649_v12 }
 0x9da   :  { %v658_v5 = vsel %vm655_vm14, %v657_v18, %v653_v16  ;;  %v668_v8 = vsel %vm667_vm15, %v1245_v63, %v664_v15 }
 0x9db   :  { %v673_v22 = vsel %vm670_vm2, %v672_v20, %v668_v8  ;;  %v677_v28 = vmul.f32 %v658_v5, %v1606_v31 }
 0x9dc   :  { %v678_v24 = vmul.f32 %v673_v22, %v1610_v34 }
 0xa37   :  { %v682_v4 = vpop.permute.xlu1 %681 }
 0xa38   :  { %v687_v19 = vmul.f32 %v682_v4, %v658_v5 }
 0xa39   :  { %v684_v21 = vpop.permute.xlu0 %683 }
 0xa3a   :  { %691 = vrot.lane.b32.xlu0 %v687_v19, %s1405_s10  ;;  %v688_v23 = vmul.f32 %v684_v21, %v673_v22 }
 0xa3c   :  { %693 = vrot.lane.b32.xlu2 %v688_v23, %s1405_s10 }
 0xa96   :  { %v694_v25 = vpop.permute.xlu2 %693 }
 0xa97   :  { %v1629_v26 = vadd.f32 %v694_v25, %v678_v24 }
 0xa99   :  { %1246 = vtanh.f32 %v1629_v26 }
 0xa9f   :  { %v1247_v27 = vpop.eup %1246 }
 0xaa0   :  { %705 = vrot.lane.b32.xlu1 %v1247_v27, %s1406_s0 }
 0xaac   :  { %v692_v29 = vpop.permute.xlu0 %691 }
 0xaad   :  { %v1634_v30 = vadd.f32 %v692_v29, %v677_v28 }
 0xaaf   :  { %1248 = vtanh.f32 %v1634_v30 }
 0xab5   :  { %v1249_v32 = vpop.eup %1248 }
 0xab6   :  { %703 = vrot.lane.b32.xlu2 %v1249_v32, %s1406_s0 }
 0xb10   :  { %v704_v33 = vpop.permute.xlu2 %703 }
 0xb11   :  { %v1640_v36 = vmul.f32 %v704_v33, %v658_v5 }
 0xb12   :  { %v706_v34 = vpop.permute.xlu1 %705 }
 0xb13   :  { %v1638_v35 = vmul.f32 %v706_v34, %v673_v22 }
 0xb15   :  { %v723_v37 = vrot.slane %v1638_v35, 7 }
 0xb17   :  { %v724_v38 = vsel %vm251_vm10, %v723_v37, %v1640_v36 }
 0xb18   :  { %725 = vrot.lane.b32.xlu0 %v724_v38, %s1405_s10 }
 0xb8a   :  { %v726_v31 = vpop.permute.xlu0 %725 }
 0xb8b   :  { %1149 = vmatmul.msk.f32.vlgmr.msra.gmra.mxu3 %vm125_vm1, %v726_v31  ;;  %v839_v31 = vld [vmem:[#allocation2 + $0x6] sm:$0x1] }
 0xc0e   :  { %v746_v42 = vpop.f32.mrf.mxu3 }
 0xc0f   :  { %v750_v43 = vrot.slane %v746_v42, 1  ;;  %v753_v44 = vadd.f32 %v746_v42, %v721_v41 }
 0xc11   :  { %v754_v49 = vadd.f32 %v750_v43, %v722_v45  ;;  %1250 = vtanh.f32 %v753_v44  ;;  %v1150_v51 = vmul.f32 -1.442695, %v753_v44  ;;  %v840_v44 = vld [vmem:[#allocation2 + $0xe] sm:$0x1] }
 0xc13   :  { %1252 = vtanh.f32 %v754_v49  ;;  %v1151_v58 = vmul.f32 -1.442695, %v754_v49 }
 0xc14   :  { %1254 = vpow2.f32 %v1150_v51 }
 0xc17   :  { %v1251_v50 = vpop.eup %1250 }
 0xc18   :  { %799 = vrot.lane.b32.xlu2 %v1251_v50, %s1406_s0 }
 0xc19   :  { %v1253_v47 = vpop.eup %1252 }
 0xc1a   :  { %801 = vrot.lane.b32.xlu1 %v1253_v47, %s1406_s0  ;;  %v1255_v52 = vpop.eup %1254 }
 0xc1b   :  { %v761_v53 = vadd.f32 1.0, %v1255_v52 }
 0xc1d   :  { %1256 = vrcp.f32 %v761_v53  ;;  %v774_v63 = vand.u32 2147483648, %v761_v53  ;;  %vm768_vm4 = vweird.f32 %v761_v53  ;;  %v772_v2 = vand.u32 2147483647, %v761_v53 }
 0xc1e   :  { %1258 = vpow2.f32 %v1151_v58 }
 0xc1f   :  { %v775_v9 = vor.u32 1.1754944e-38, %v774_v63  ;;  %vm773_vm6 = vcmp.eq.f32.partialorder %v772_v2, 8.507059e+37 }
 0xc23   :  { %v1257_v54 = vpop.eup %1256 }
 0xc24   :  { %v764_v57 = vmul.f32 %v1257_v54, %v761_v53  ;;  %v1259_v61 = vpop.eup %1258  ;;  %vm769_vm3 = vweird.f32 %v1257_v54 }
 0xc25   :  { %v762_v0 = vadd.f32 1.0, %v1259_v61  ;;  %vm770_vm5 = vmor %vm768_vm4, %vm769_vm3 }
 0xc26   :  { %v765_v59 = vsub.f32 1.0, %v764_v57 }
 0xc27   :  { %1260 = vrcp.f32 %v762_v0  ;;  %v789_v18 = vand.u32 2147483648, %v762_v0  ;;  %vm783_vm8 = vweird.f32 %v762_v0  ;;  %v787_v3 = vand.u32 2147483647, %v762_v0 }
 0xc28   :  { %v766_v60 = vmul.f32 %v1257_v54, %v765_v59 }
 0xc29   :  { %v790_v5 = vor.u32 1.1754944e-38, %v789_v18  ;;  %vm788_vm11 = vcmp.eq.f32.partialorder %v787_v3, 8.507059e+37 }
 0xc2a   :  { %v767_v62 = vadd.f32 %v1257_v54, %v766_v60 }
 0xc2c   :  { %v771_v6 = vsel %vm770_vm5, %v1257_v54, %v767_v62 }
 0xc2d   :  { %v776_v11 = vsel %vm773_vm6, %v775_v9, %v771_v6  ;;  %v1261_v13 = vpop.eup %1260 }
 0xc2e   :  { %v779_v14 = vmul.f32 %v1261_v13, %v762_v0  ;;  %vm784_vm7 = vweird.f32 %v1261_v13  ;;  %v795_v21 = vmul.f32 %v776_v11, %v1634_v30 }
 0xc2f   :  { %vm785_vm9 = vmor %vm783_vm8, %vm784_vm7 }
 0xc30   :  { %v780_v15 = vsub.f32 1.0, %v779_v14 }
 0xc32   :  { %v781_v16 = vmul.f32 %v1261_v13, %v780_v15 }
 0xc34   :  { %v782_v17 = vadd.f32 %v1261_v13, %v781_v16 }
 0xc36   :  { %v786_v4 = vsel %vm785_vm9, %v1261_v13, %v782_v17 }
 0xc37   :  { %v791_v19 = vsel %vm788_vm11, %v790_v5, %v786_v4 }
 0xc38   :  { %v796_v25 = vmul.f32 %v791_v19, %v1629_v26 }
 0xc72   :  { %v800_v10 = vpop.permute.xlu2 %799 }
 0xc73   :  { %v805_v12 = vmul.f32 %v800_v10, %v776_v11 }
 0xc75   :  { %809 = vrot.lane.b32.xlu1 %v805_v12, %s1405_s10 }
 0xc8c   :  { %v802_v8 = vpop.permute.xlu1 %801 }
 0xc8d   :  { %v806_v20 = vmul.f32 %v802_v8, %v791_v19 }
 0xc8f   :  { %811 = vrot.lane.b32.xlu0 %v806_v20, %s1405_s10 }
 0xce7   :  { %v810_v22 = vpop.permute.xlu1 %809 }
 0xce8   :  { %v1652_v23 = vadd.f32 %v810_v22, %v795_v21 }
 0xcea   :  { %1262 = vtanh.f32 %v1652_v23 }
 0xcf0   :  { %v1263_v24 = vpop.eup %1262 }
 0xcf1   :  { %821 = vrot.lane.b32.xlu0 %v1263_v24, %s1406_s0 }
 0xd01   :  { %v812_v27 = vpop.permute.xlu0 %811 }
 0xd02   :  { %v1657_v28 = vadd.f32 %v812_v27, %v796_v25 }
 0xd04   :  { %1264 = vtanh.f32 %v1657_v28 }
 0xd0a   :  { %v1265_v29 = vpop.eup %1264 }
 0xd0b   :  { %823 = vrot.lane.b32.xlu2 %v1265_v29, %s1406_s0 }
 0xd63   :  { %v822_v32 = vpop.permute.xlu0 %821 }
 0xd64   :  { %v1663_v34 = vmul.f32 %v822_v32, %v776_v11 }
 0xd65   :  { %v824_v30 = vpop.permute.xlu2 %823 }
 0xd66   :  { %v1661_v33 = vmul.f32 %v824_v30, %v791_v19 }
 0xd68   :  { %v841_v37 = vrot.slane %v1661_v33, 7 }
 0xd6a   :  { %v842_v38 = vsel %vm251_vm10, %v841_v37, %v1663_v34 }
 0xd6b   :  { %843 = vrot.lane.b32.xlu1 %v842_v38, %s1405_s10 }
 0xddd   :  { %v844_v26 = vpop.permute.xlu1 %843 }
 0xdde   :  { %1152 = vmatmul.msk.f32.vlgmr.msrb.gmra.mxu0 %vm125_vm1, %v844_v26 }
 0xe5b   :  { %v864_v41 = vpop.f32.mrf.mxu0 }
 0xe5c   :  { %v868_v42 = vrot.slane %v864_v41, 1  ;;  %v871_v43 = vadd.f32 %v864_v41, %v839_v31  ;;  %v957_v41 = vld [vmem:[#allocation2 + $0x7] sm:$0x1] }
 0xe5e   :  { %v872_v45 = vadd.f32 %v868_v42, %v840_v44  ;;  %1266 = vtanh.f32 %v871_v43  ;;  %v1153_v53 = vmul.f32 -1.442695, %v871_v43 }
 0xe60   :  { %1268 = vtanh.f32 %v872_v45  ;;  %v1154_v47 = vmul.f32 -1.442695, %v872_v45  ;;  %v958_v45 = vld [vmem:[#allocation2 + $0xf] sm:$0x1] }
 0xe62   :  { %1270 = vpow2.f32 %v1154_v47 }
 0xe64   :  { %v1267_v49 = vpop.eup %1266 }
 0xe65   :  { %917 = vrot.lane.b32.xlu0 %v1267_v49, %s1406_s0 }
 0xe66   :  { %v1269_v50 = vpop.eup %1268 }
 0xe67   :  { %919 = vrot.lane.b32.xlu2 %v1269_v50, %s1406_s0 }
 0xe68   :  { %v1271_v51 = vpop.eup %1270 }
 0xe69   :  { %v880_v52 = vadd.f32 1.0, %v1271_v51 }
 0xe6b   :  { %1272 = vrcp.f32 %v880_v52  ;;  %v907_v63 = vand.u32 2147483648, %v880_v52  ;;  %vm901_vm13 = vweird.f32 %v880_v52  ;;  %v905_v0 = vand.u32 2147483647, %v880_v52 }
 0xe6c   :  { %1274 = vpow2.f32 %v1153_v53 }
 0xe6d   :  { %v908_v6 = vor.u32 1.1754944e-38, %v907_v63  ;;  %vm906_vm15 = vcmp.eq.f32.partialorder %v905_v0, 8.507059e+37 }
 0xe71   :  { %v1273_v54 = vpop.eup %1272 }
 0xe72   :  { %v897_v57 = vmul.f32 %v1273_v54, %v880_v52  ;;  %v1275_v59 = vpop.eup %1274  ;;  %vm902_vm12 = vweird.f32 %v1273_v54 }
 0xe73   :  { %v879_v60 = vadd.f32 1.0, %v1275_v59  ;;  %vm903_vm14 = vmor %vm901_vm13, %vm902_vm12 }
 0xe74   :  { %v898_v58 = vsub.f32 1.0, %v897_v57 }
 0xe75   :  { %1276 = vrcp.f32 %v879_v60  ;;  %v892_v17 = vand.u32 2147483648, %v879_v60  ;;  %vm886_vm3 = vweird.f32 %v879_v60  ;;  %v890_v18 = vand.u32 2147483647, %v879_v60 }
 0xe76   :  { %v899_v61 = vmul.f32 %v1273_v54, %v898_v58 }
 0xe77   :  { %v893_v4 = vor.u32 1.1754944e-38, %v892_v17  ;;  %vm891_vm5 = vcmp.eq.f32.partialorder %v890_v18, 8.507059e+37 }
 0xe78   :  { %v900_v62 = vadd.f32 %v1273_v54, %v899_v61 }
 0xe7a   :  { %v904_v2 = vsel %vm903_vm14, %v1273_v54, %v900_v62  ;;  %vm245_vm14 = vcmask 253952  }
 0xe7b   :  { %v1277_v9 = vpop.eup %1276  ;;  %v909_v11 = vsel %vm906_vm15, %v908_v6, %v904_v2 }
 0xe7c   :  { %v882_v13 = vmul.f32 %v1277_v9, %v879_v60  ;;  %vm887_vm2 = vweird.f32 %v1277_v9  ;;  %v914_v24 = vmul.f32 %v909_v11, %v1657_v28 }
 0xe7d   :  { %vm888_vm4 = vmor %vm886_vm3, %vm887_vm2 }
 0xe7e   :  { %v883_v14 = vsub.f32 1.0, %v882_v13 }
 0xe80   :  { %v884_v15 = vmul.f32 %v1277_v9, %v883_v14 }
 0xe82   :  { %v885_v16 = vadd.f32 %v1277_v9, %v884_v15 }
 0xe84   :  { %v889_v3 = vsel %vm888_vm4, %v1277_v9, %v885_v16 }
 0xe85   :  { %v894_v8 = vsel %vm891_vm5, %v893_v4, %v889_v3 }
 0xe86   :  { %v913_v20 = vmul.f32 %v894_v8, %v1652_v23 }
 0xec1   :  { %v920_v10 = vpop.permute.xlu2 %919 }
 0xec2   :  { %v924_v12 = vmul.f32 %v920_v10, %v909_v11 }
 0xec4   :  { %929 = vrot.lane.b32.xlu1 %v924_v12, %s1405_s10 }
 0xed7   :  { %v918_v5 = vpop.permute.xlu0 %917 }
 0xed8   :  { %v923_v19 = vmul.f32 %v918_v5, %v894_v8 }
 0xeda   :  { %927 = vrot.lane.b32.xlu2 %v923_v19, %s1405_s10 }
 0xf34   :  { %v928_v21 = vpop.permute.xlu2 %927 }
 0xf35   :  { %v1675_v22 = vadd.f32 %v928_v21, %v913_v20 }
 0xf36   :  { %v930_v25 = vpop.permute.xlu1 %929 }
 0xf37   :  { %1278 = vtanh.f32 %v1675_v22  ;;  %v1679_v27 = vadd.f32 %v930_v25, %v914_v24 }
 0xf39   :  { %1280 = vtanh.f32 %v1679_v27 }
 0xf3d   :  { %v1279_v29 = vpop.eup %1278 }
 0xf3e   :  { %939 = vrot.lane.b32.xlu1 %v1279_v29, %s1406_s0 }
 0xf3f   :  { %v1281_v32 = vpop.eup %1280 }
 0xf40   :  { %941 = vrot.lane.b32.xlu0 %v1281_v32, %s1406_s0 }
 0xfb0   :  { %v940_v30 = vpop.permute.xlu1 %939 }
 0xfb1   :  { %v1686_v38 = vmul.f32 %v940_v30, %v894_v8 }
 0xfb2   :  { %v942_v23 = vpop.permute.xlu0 %941 }
 0xfb3   :  { %v1684_v37 = vmul.f32 %v942_v23, %v909_v11 }
 0xfb5   :  { %v959_v28 = vrot.slane %v1684_v37, 7 }
 0xfb7   :  { %v960_v26 = vsel %vm251_vm10, %v959_v28, %v1686_v38 }
 0xfb8   :  { %961 = vrot.lane.b32.xlu2 %v960_v26, %s1405_s10 }
0x1012   :  { %v962_v31 = vpop.permute.xlu2 %961 }
0x1013   :  { %1155 = vmatmul.msk.f32.vlgmr.msra.gmra.mxu1 %vm125_vm1, %v962_v31 }
0x1090   :  { %v982_v42 = vpop.f32.mrf.mxu1 }
0x1091   :  { %v986_v43 = vrot.slane %v982_v42, 1  ;;  %v989_v44 = vadd.f32 %v982_v42, %v957_v41  ;;  %v119_v41 = vld [vmem:[%s1773_s4 + $0x10] sm:$0xff]  ;;  %v118_v42 = vld [vmem:[%s1773_s4 + $0x8] sm:$0xff] }
0x1093   :  { %v990_v49 = vadd.f32 %v986_v43, %v958_v45  ;;  %1282 = vtanh.f32 %v989_v44  ;;  %v1156_v51 = vmul.f32 -1.442695, %v989_v44  ;;  %v117_v43 = vld [vmem:[%s1773_s4] sm:$0xff] }
0x1095   :  { %1284 = vtanh.f32 %v990_v49  ;;  %v1157_v52 = vmul.f32 -1.442695, %v990_v49 }
0x1096   :  { %1286 = vpow2.f32 %v1156_v51  ;;  %v1169_v51 = vld [vmem:[#allocation9] ss:$0 sm:$0xff] }
0x1097   :  { %1288 = vpow2.f32 %v1157_v52 }
0x1099   :  { %v1283_v50 = vpop.eup %1282 }
0x109a   :  { %1035 = vrot.lane.b32.xlu0 %v1283_v50, %s1406_s0 }
0x109b   :  { %v1285_v47 = vpop.eup %1284 }
0x109c   :  { %1037 = vrot.lane.b32.xlu1 %v1285_v47, %s1406_s0  ;;  %v1287_v53 = vpop.eup %1286 }
0x109d   :  { %v1289_v54 = vpop.eup %1288  ;;  %v997_v57 = vadd.f32 1.0, %v1287_v53 }
0x109e   :  { %v998_v58 = vadd.f32 1.0, %v1289_v54 }
0x109f   :  { %1290 = vrcp.f32 %v997_v57  ;;  %v1010_v10 = vand.u32 2147483648, %v997_v57  ;;  %vm1004_vm6 = vweird.f32 %v997_v57  ;;  %v1008_v11 = vand.u32 2147483647, %v997_v57 }
0x10a0   :  { %1292 = vrcp.f32 %v998_v58  ;;  %v1025_v14 = vand.u32 2147483648, %v998_v58  ;;  %vm1019_vm9 = vweird.f32 %v998_v58  ;;  %v1023_v16 = vand.u32 2147483647, %v998_v58 }
0x10a1   :  { %v1011_v15 = vor.u32 1.1754944e-38, %v1010_v10  ;;  %vm1009_vm11 = vcmp.eq.f32.partialorder %v1008_v11, 8.507059e+37 }
0x10a2   :  { %v1026_v5 = vor.u32 1.1754944e-38, %v1025_v14  ;;  %vm1024_vm13 = vcmp.eq.f32.partialorder %v1023_v16, 8.507059e+37 }
0x10a5   :  { %v1291_v59 = vpop.eup %1290 }
0x10a6   :  { %v1293_v60 = vpop.eup %1292  ;;  %v1000_v61 = vmul.f32 %v1291_v59, %v997_v57  ;;  %vm1005_vm10 = vweird.f32 %v1291_v59 }
0x10a7   :  { %v1015_v62 = vmul.f32 %v1293_v60, %v998_v58  ;;  %vm1006_vm7 = vmor %vm1004_vm6, %vm1005_vm10  ;;  %vm1020_vm8 = vweird.f32 %v1293_v60 }
0x10a8   :  { %v1001_v63 = vsub.f32 1.0, %v1000_v61  ;;  %vm1021_vm12 = vmor %vm1019_vm9, %vm1020_vm8 }
0x10a9   :  { %v1016_v0 = vsub.f32 1.0, %v1015_v62 }
0x10aa   :  { %v1002_v2 = vmul.f32 %v1291_v59, %v1001_v63 }
0x10ab   :  { %v1017_v6 = vmul.f32 %v1293_v60, %v1016_v0 }
0x10ac   :  { %v1003_v9 = vadd.f32 %v1291_v59, %v1002_v2 }
0x10ad   :  { %v1018_v12 = vadd.f32 %v1293_v60, %v1017_v6 }
0x10ae   :  { %v1007_v13 = vsel %vm1006_vm7, %v1291_v59, %v1003_v9 }
0x10af   :  { %v1012_v18 = vsel %vm1009_vm11, %v1011_v15, %v1007_v13  ;;  %v1022_v3 = vsel %vm1021_vm12, %v1293_v60, %v1018_v12 }
0x10b0   :  { %v1027_v19 = vsel %vm1024_vm13, %v1026_v5, %v1022_v3  ;;  %v1031_v21 = vmul.f32 %v1012_v18, %v1675_v22 }
0x110c   :  { %v1036_v17 = vpop.permute.xlu0 %1035 }
0x110d   :  { %v1041_v4 = vmul.f32 %v1036_v17, %v1012_v18 }
0x110e   :  { %v1038_v8 = vpop.permute.xlu1 %1037 }
0x110f   :  { %1045 = vrot.lane.b32.xlu2 %v1041_v4, %s1405_s10  ;;  %v1042_v20 = vmul.f32 %v1038_v8, %v1027_v19 }
0x1111   :  { %1047 = vrot.lane.b32.xlu0 %v1042_v20, %s1405_s10 }
0x1119   :  { %239 = vrot.lane.b32.xlu0 %v1545_v7, %s1405_s10  ;;  %v1032_v7 = vmul.f32 %v1027_v19, %v1679_v27 }
0x1121   :  { %595 = vrot.lane.b32.xlu0 %v1617_v40, %s1405_s10 }
0x1129   :  { %949 = vrot.lane.b32.xlu0 %v1686_v38, %s1405_s10 }
0x1131   :  { %361 = vrot.lane.b32.xlu0 %v1569_v55, %s1405_s10 }
0x1139   :  { %715 = vrot.lane.b32.xlu0 %v1638_v35, %s1405_s10 }
0x1169   :  { %v1046_v24 = vpop.permute.xlu2 %1045 }
0x116a   :  { %v1051_v25 = vadd.f32 %v1046_v24, %v1031_v21 }
0x116c   :  { %1294 = vtanh.f32 %v1051_v25 }
0x1172   :  { %v1295_v29 = vpop.eup %1294 }
0x1173   :  { %1057 = vrot.lane.b32.xlu1 %v1295_v29, %s1406_s0 }
0x117b   :  { %359 = vrot.lane.b32.xlu1 %v1571_v56, %s1405_s10 }
0x1183   :  { %713 = vrot.lane.b32.xlu1 %v1640_v36, %s1405_s10  ;;  %v1048_v55 = vpop.permute.xlu0 %1047 }
0x1184   :  { %v1052_v40 = vadd.f32 %v1048_v55, %v1032_v7 }
0x1186   :  { %1296 = vtanh.f32 %v1052_v40 }
0x118b   :  { %479 = vrot.lane.b32.xlu1 %v1592_v46, %s1405_s10  ;;  %v240_v35 = vpop.permute.xlu0 %239 }
0x118c   :  { %v1297_v22 = vpop.eup %1296  ;;  %246 = vst.msk [vmem:[#allocation3] sm:$0x1] %vm245_vm14, %v240_v35 }
0x118d   :  { %1059 = vrot.lane.b32.xlu2 %v1297_v22, %s1406_s0 }
0x1193   :  { %v596_v32 = vpop.permute.xlu0 %595 }
0x1194   :  { %601 = vst.msk [vmem:[#allocation3 + $0x3] sm:$0x1] %vm245_vm14, %v596_v32 }
0x1195   :  { %477 = vrot.lane.b32.xlu2 %v1594_v48, %s1405_s10 }
0x119b   :  { %v950_v56 = vpop.permute.xlu0 %949 }
0x119c   :  { %955 = vst.msk [vmem:[#allocation3 + $0x6] sm:$0x1] %vm245_vm14, %v950_v56 }
0x119d   :  { %831 = vrot.lane.b32.xlu2 %v1663_v34, %s1405_s10 }
0x11a3   :  { %v362_v36 = vpop.permute.xlu0 %361 }
0x11a4   :  { %366 = vst.msk [vmem:[#allocation3 + $0x9] sm:$0x1] %vm245_vm14, %v362_v36 }
0x11a5   :  { %241 = vrot.lane.b32.xlu2 %v1542_v1, %s1405_s10 }
0x11ab   :  { %v716_v46 = vpop.permute.xlu0 %715 }
0x11ac   :  { %720 = vst.msk [vmem:[#allocation3 + $0xc] sm:$0x1] %vm245_vm14, %v716_v46 }
0x11ad   :  { %597 = vrot.lane.b32.xlu2 %v1615_v39, %s1405_s10 }
0x11b5   :  { %951 = vrot.lane.b32.xlu2 %v1684_v37, %s1405_s10 }
0x11e5   :  { %v1058_v48 = vpop.permute.xlu1 %1057 }
0x11e6   :  { %v1063_v27 = vmul.f32 %v1058_v48, %v1012_v18 }
0x11e7   :  { %v1060_v30 = vpop.permute.xlu2 %1059 }
0x11e8   :  { %1067 = vrot.lane.b32.xlu1 %v1063_v27, %s1405_s10  ;;  %v1064_v34 = vmul.f32 %v1060_v30, %v1027_v19 }
0x11ea   :  { %1069 = vrot.lane.b32.xlu0 %v1064_v34, %s1405_s10 }
0x11ed   :  { %v360_v23 = vpop.permute.xlu1 %359 }
0x11ee   :  { %365 = vst.msk [vmem:[#allocation3 + $0x1] sm:$0x1] %vm245_vm14, %v360_v23 }
0x11ef   :  { %v478_v1 = vpop.permute.xlu2 %477 }
0x11f0   :  { %833 = vrot.lane.b32.xlu1 %v1661_v33, %s1405_s10  ;;  %483 = vst.msk [vmem:[#allocation3 + $0x2] sm:$0x1] %vm245_vm14, %v478_v1  ;;  %v120_v33 = vld [vmem:[%s1773_s4 + $0x18] sm:$0xff]  ;;  %s1407_s4 = smov [#allocation10]  }
0x11f1   :  { %1099 = vmatpush.msrb.mxu2 %v120_v33  ;;  %s1116_s20 = sshll.u32 %s1407_s4, 4  ;;  %s1117_s20 = int_to_ptr.vmem [resolvable:$true] %s1116_s20 }
0x11f3   :  { %1100 = vmatpush.msrb.mxu2 %v119_v41 }
0x11f5   :  { %v714_v39 = vpop.permute.xlu1 %713  ;;  %1101 = vmatpush.msrb.mxu2 %v118_v42 }
0x11f6   :  { %719 = vst.msk [vmem:[#allocation3 + $0x4] sm:$0x1] %vm245_vm14, %v714_v39 }
0x11f7   :  { %v832_v37 = vpop.permute.xlu2 %831  ;;  %1102 = vmatpush.msrb.mxu2 %v117_v43 }
0x11f8   :  { %837 = vst.msk [vmem:[#allocation3 + $0x5] sm:$0x1] %vm245_vm14, %v832_v37 }
0x11fd   :  { %v480_v38 = vpop.permute.xlu1 %479 }
0x11fe   :  { %484 = vst.msk [vmem:[#allocation3 + $0xa] sm:$0x1] %vm245_vm14, %v480_v38 }
0x11ff   :  { %v242_v28 = vpop.permute.xlu2 %241 }
0x1200   :  { %247 = vst.msk [vmem:[#allocation3 + $0x8] sm:$0x1] %vm245_vm14, %v242_v28 }
0x1207   :  { %v598_v26 = vpop.permute.xlu2 %597 }
0x1208   :  { %602 = vst.msk [vmem:[#allocation3 + $0xb] sm:$0x1] %vm245_vm14, %v598_v26 }
0x120f   :  { %v952_v31 = vpop.permute.xlu2 %951 }
0x1210   :  { %956 = vst.msk [vmem:[#allocation3 + $0xe] sm:$0x1] %vm245_vm14, %v952_v31 }
0x125a   :  { %v1068_v44 = vpop.permute.xlu1 %1067 }
0x125b   :  { %1073 = vst.msk [vmem:[#allocation3 + $0x7] sm:$0x1] %vm245_vm14, %v1068_v44 }
0x125c   :  { %v1070_v45 = vpop.permute.xlu0 %1069 }
0x125d   :  { %1074 = vst.msk [vmem:[#allocation3 + $0xf] sm:$0x1] %vm245_vm14, %v1070_v45 }
0x1262   :  { %v834_v49 = vpop.permute.xlu1 %833  ;;  %v1075_v50 = vld [vmem:[#allocation3] sm:$0xff] }
0x1263   :  { %838 = vst.msk [vmem:[#allocation3 + $0xd] sm:$0x1] %vm245_vm14, %v834_v49  ;;  %1158 = vmatmul.msk.f32.vlgmr.msrb.gmra.mxu2 %vm125_vm1, %v1075_v50 }
0x126a   :  { %v1076_v47 = vld [vmem:[#allocation3 + $0x8] sm:$0xff] }
0x126b   :  { %1159 = vmatmul.msk.f32.gmra.mxu2 %vm125_vm1, %v1076_v47 }
0x12e6   :  { %v1104_v52 = vpop.f32.mrf.mxu2 }
0x12e7   :  { %v1105_v53 = vadd.f32 %v1169_v51, %v1104_v52 }
0x12e9   :  { %1110 = vst.msk [vmem:[#allocation10] sm:$0xff] %vm81_vm0, %v1105_v53 }
0x12ee   :  { %v1107_v54 = vpop.f32.mrf.mxu2 }
0x12ef   :  { %v1108_v57 = vadd.f32 %v1169_v51, %v1107_v54 }
0x12f1   :  { %1111 = vst.msk [vmem:[#allocation10 + $0x8] sm:$0xff] %vm81_vm0, %v1108_v57 }
0x12f2   :  { %1124 = dma.vmem_to_hbm [thread:$0]  %s1117_s20, 256, %s1119_s22, [#allocation6], %s1402_s15, %s1402_s15, %s1403_s16  }
0x12f3   :  { %1398 = dma.done.wait [#allocation6], 256  }
0x12f4   :  { %1399 = vsyncadd [#allocation6], 4294967040 }
0x12f5   :  { %1129 = vsyncpa [#allocation5], 1 }
0x12f6   :  { %1130 = vsyncpa [#allocation8], 1 }
0x12f7   :  { %1131 = vsyncpa [#allocation6], 1 }

</bundles_post_ra>
